<compile_context>
chip_gen: v6e
topology: v6e:2x2x1
jax: 0.10.0
libtpu: 0.0.40
codegen_flags: <defaults>
</compile_context>

<pallas_src>
from functools import partial

import jax
import jax.numpy as jnp
from jax.experimental import pallas as pl
from jax.experimental.pallas import tpu as pltpu


def _pixel_shuffle3d_kernel(ph_ref, pw_ref, x_ref, o_ref, *, r, k):
    # ph_ref: (r, H, Hr)    one-hot, ph[rh, h, h*r + rh] = 1
    # pw_ref: (r*W, Wr)     one-hot, pw[rw*W + w, w*r + rw] = 1
    # x_ref : (1, co, r, r, r, k, H, W)  indexed [b, c, rd, rh, rw, kd, h, w]
    # o_ref : (1, co, k*r, Hr, Wr)
    co = x_ref.shape[1]
    H, W = x_ref.shape[-2], x_ref.shape[-1]
    Hr, Wr = H * r, W * r
    f32 = jnp.float32
    prec = jax.lax.Precision.HIGHEST   # exact permutation of (normal) floats

    pw = pw_ref[...]                   # (r*W, Wr), loaded once per grid step

    def depth_body(kd, carry):
        for rd in range(r):            # r is tiny and static -> unrolled
            # (co, r, r, H, W) = [c, rh, rw, h, w] for this (rd, kd)
            xall = x_ref[0, :, rd, :, :, kd, :, :]

            # ---- height interleave: h -> h*r + rh (contract over h) ----
            u = None
            for rh in range(r):
                xsT = jnp.swapaxes(xall[:, rh], -1, -2)          # (co, r, W, H)
                lhs = xsT.reshape(co * r * W, H).astype(f32)
                term = jnp.dot(lhs, ph_ref[rh],
                               precision=prec,
                               preferred_element_type=f32)       # (co*r*W, Hr)
                u = term if u is None else u + term

            # ---- width interleave: (rw, w) -> w*r + rw, one fused dot ----
            uT = jnp.swapaxes(u.reshape(co, r * W, Hr), -1, -2)  # (co, Hr, r*W)
            y = jnp.dot(uT.reshape(co * Hr, r * W), pw,
                        precision=prec,
                        preferred_element_type=f32)              # (co*Hr, Wr)

            # depth interleave = dense store on a *major* dim of the out block
            o_ref[0, :, kd * r + rd, :, :] = (
                y.reshape(co, Hr, Wr).astype(o_ref.dtype))
        return carry

    jax.lax.fori_loop(0, k, depth_body, 0)


def pixel_shuffle_3d(x, upscale_factor, *, target_block_bytes=2 * 1024 * 1024):
    r = int(upscale_factor)
    B, C, D, H, W = x.shape
    assert C % (r ** 3) == 0, "channels must be divisible by upscale_factor**3"
    co = C // (r ** 3)
    Dr, Hr, Wr = D * r, H * r, W * r
    itemsize = jnp.dtype(x.dtype).itemsize

    # ---- adaptive block sizing: ~MiB-scale blocks, VMEM-safe on v7x ----
    def divisors_desc(n):
        return [d for d in range(n, 0, -1) if n % d == 0]

    def slice_bytes(c_blk):            # bytes of one depth slice (in == out)
        return c_blk * (r ** 3) * H * W * itemsize

    co_blk = next((c for c in divisors_desc(co)
                   if slice_bytes(c) <= target_block_bytes), 1)
    k = next((kk for kk in divisors_desc(D)
              if kk * slice_bytes(co_blk) <= target_block_bytes), 1)
    # keep at least 2 grid steps so megacore (v7x) has parallel work to split
    if B * (co // co_blk) * (D // k) < 2 and D >= 2:
        k = max(d for d in range(1, D + 1) if D % d == 0 and D // d >= 2)

    grid = (B, co // co_blk, D // k)

    # ---- one-hot interleave matrices, hoisted out of the kernel ----
    f32 = jnp.float32
    rh_i = jax.lax.broadcasted_iota(jnp.int32, (r, H, Hr), 0)
    h_i = jax.lax.broadcasted_iota(jnp.int32, (r, H, Hr), 1)
    ho_i = jax.lax.broadcasted_iota(jnp.int32, (r, H, Hr), 2)
    ph = (ho_i == h_i * r + rh_i).astype(f32)                      # (r, H, Hr)

    rw_i = jax.lax.broadcasted_iota(jnp.int32, (r, W, Wr), 0)
    w_i = jax.lax.broadcasted_iota(jnp.int32, (r, W, Wr), 1)
    wo_i = jax.lax.broadcasted_iota(jnp.int32, (r, W, Wr), 2)
    pw = (wo_i == w_i * r + rw_i).astype(f32).reshape(r * W, Wr)   # (r*W, Wr)

    # Free contiguous view, identical to torch's .view(B, co, r, r, r, D, H, W)
    x8 = x.reshape(B, co, r, r, r, D, H, W)

    out_elems = B * co * Dr * Hr * Wr
    cost = pl.CostEstimate(
        flops=2 * out_elems * (r * H + r * W),   # one-hot interleave matmuls
        transcendentals=0,
        bytes_accessed=2 * x.size * itemsize,    # pure permutation: read+write
    )

    return pl.pallas_call(
        partial(_pixel_shuffle3d_kernel, r=r, k=k),
        out_shape=jax.ShapeDtypeStruct((B, co, Dr, Hr, Wr), x.dtype),
        grid=grid,
        in_specs=[
            pl.BlockSpec((r, H, Hr), lambda b, ci, dc: (0, 0, 0)),
            pl.BlockSpec((r * W, Wr), lambda b, ci, dc: (0, 0)),
            pl.BlockSpec((1, co_blk, r, r, r, k, H, W),
                         lambda b, ci, dc: (b, ci, 0, 0, 0, dc, 0, 0)),
        ],
        out_specs=pl.BlockSpec((1, co_blk, k * r, Hr, Wr),
                               lambda b, ci, dc: (b, ci, dc, 0, 0)),
        compiler_params=pltpu.CompilerParams(
            dimension_semantics=("parallel", "parallel", "parallel"),
            vmem_limit_bytes=48 * 1024 * 1024,
        ),
        cost_estimate=cost,
    )(ph, pw, x8)


if __name__ == "__main__":
    # Small shapes consistent with the gigagan upsampler usage:
    # upscale_factor=2, channels = out_channels * 8.
    B, r = 2, 2
    co, D, H, W = 4, 8, 8, 8
    C = co * r ** 3                            # 32

    key = jax.random.PRNGKey(0)
    x = jax.random.normal(key, (B, C, D, H, W), dtype=jnp.float32)

    y = jax.jit(partial(pixel_shuffle_3d, upscale_factor=r))(x)
    jax.block_until_ready(y)

    # Pure-JAX reference of the PyTorch module.
    ref = x.reshape(B, co, r, r, r, D, H, W)
    ref = jnp.transpose(ref, (0, 1, 5, 2, 6, 3, 7, 4))
    ref = ref.reshape(B, co, D * r, H * r, W * r)

    assert y.shape == ref.shape and y.dtype == x.dtype
    assert jnp.allclose(y, ref, rtol=0.0, atol=1e-6), "pixel shuffle mismatch"
    print("KERNEL_OK")
</pallas_src>

<mosaic_0001>
module attributes {stable_mosaic.version = 11 : i64} {
  func.func @_pixel_shuffle3d_kernel(%arg0: i32, %arg1: i32, %arg2: i32, %arg3: memref<2x8x16xf32, #tpu.memory_space<vmem>>, %arg4: memref<16x16xf32, #tpu.memory_space<vmem>>, %arg5: memref<1x4x2x2x2x8x8x8xf32, #tpu.memory_space<vmem>>, %arg6: memref<1x4x16x16x16xf32, #tpu.memory_space<vmem>>) attributes {dimension_semantics = [#tpu.dimension_semantics<parallel>, #tpu.dimension_semantics<parallel>, #tpu.dimension_semantics<parallel>], iteration_bounds = array<i64: 2, 1, 1>, scalar_prefetch = 0 : i64, scratch_operands = 0 : i64, tpu.core_type = #tpu.core_type<tc>, window_params = [{pipeline_mode = #tpu.pipeline_mode<synchronous>, transform_indices = @transform_0, window_bounds = array<i64: 2, 8, 16>}, {pipeline_mode = #tpu.pipeline_mode<synchronous>, transform_indices = @transform_1, window_bounds = array<i64: 16, 16>}, {transform_indices = @transform_2, window_bounds = array<i64: 1, 4, 2, 2, 2, 8, 8, 8>}, {transform_indices = @transform_3, window_bounds = array<i64: 1, 4, 16, 16, 16>}]} {
    %c0 = arith.constant 0 : index
    %c0_0 = arith.constant 0 : index
    %0 = vector.load %arg4[%c0, %c0_0] : memref<16x16xf32, #tpu.memory_space<vmem>>, vector<16x16xf32>
    %c0_i32 = arith.constant 0 : i32
    %c8_i32 = arith.constant 8 : i32
    %1 = arith.addi %c0_i32, %c8_i32 : i32
    %c1_i32 = arith.constant 1 : i32
    scf.for %arg7 = %c0_i32 to %1 step %c1_i32  : i32 {
      %c0_2 = arith.constant 0 : index
      %c0_3 = arith.constant 0 : index
      %c0_4 = arith.constant 0 : index
      %c0_5 = arith.constant 0 : index
      %c0_6 = arith.constant 0 : index
      %2 = arith.index_cast %arg7 : i32 to index
      %c0_7 = arith.constant 0 : index
      %c0_8 = arith.constant 0 : index
      %3 = vector.load %arg5[%c0_2, %c0_3, %c0_4, %c0_5, %c0_6, %2, %c0_7, %c0_8] : memref<1x4x2x2x2x8x8x8xf32, #tpu.memory_space<vmem>>, vector<1x4x1x2x2x1x8x8xf32>
      %4 = vector.shape_cast %3 : vector<1x4x1x2x2x1x8x8xf32> to vector<4x2x2x8x8xf32>
      %5 = vector.extract_strided_slice %4 {offsets = [0, 0, 0, 0, 0], sizes = [4, 1, 2, 8, 8], strides = [1, 1, 1, 1, 1]} : vector<4x2x2x8x8xf32> to vector<4x1x2x8x8xf32>
      %6 = vector.shape_cast %5 : vector<4x1x2x8x8xf32> to vector<4x2x8x8xf32>
      %7 = tpu.transpose %6, [0, 1, 3, 2] : vector<4x2x8x8xf32> -> vector<4x2x8x8xf32>
      %8 = vector.shape_cast %7 : vector<4x2x8x8xf32> to vector<64x8xf32>
      %c0_9 = arith.constant 0 : index
      %c0_10 = arith.constant 0 : index
      %c0_11 = arith.constant 0 : index
      %9 = vector.load %arg3[%c0_9, %c0_10, %c0_11] : memref<2x8x16xf32, #tpu.memory_space<vmem>>, vector<1x8x16xf32>
      %10 = vector.shape_cast %9 : vector<1x8x16xf32> to vector<8x16xf32>
      %cst = arith.constant dense<0.000000e+00> : vector<64x16xf32>
      %11 = tpu.matmul %8, %10, %cst {dimension_numbers = #tpu.dot_dimension_numbers<[1], [0], [0], [1], [0, 0, 1, 1], [], []>, precision = #tpu.contract_precision<fp32>} : vector<64x8xf32>, vector<8x16xf32>, vector<64x16xf32> -> vector<64x16xf32>
      %12 = vector.extract_strided_slice %4 {offsets = [0, 1, 0, 0, 0], sizes = [4, 1, 2, 8, 8], strides = [1, 1, 1, 1, 1]} : vector<4x2x2x8x8xf32> to vector<4x1x2x8x8xf32>
      %13 = vector.shape_cast %12 : vector<4x1x2x8x8xf32> to vector<4x2x8x8xf32>
      %14 = tpu.transpose %13, [0, 1, 3, 2] : vector<4x2x8x8xf32> -> vector<4x2x8x8xf32>
      %15 = vector.shape_cast %14 : vector<4x2x8x8xf32> to vector<64x8xf32>
      %c1 = arith.constant 1 : index
      %c0_12 = arith.constant 0 : index
      %c0_13 = arith.constant 0 : index
      %16 = vector.load %arg3[%c1, %c0_12, %c0_13] : memref<2x8x16xf32, #tpu.memory_space<vmem>>, vector<1x8x16xf32>
      %17 = vector.shape_cast %16 : vector<1x8x16xf32> to vector<8x16xf32>
      %cst_14 = arith.constant dense<0.000000e+00> : vector<64x16xf32>
      %18 = tpu.matmul %15, %17, %cst_14 {dimension_numbers = #tpu.dot_dimension_numbers<[1], [0], [0], [1], [0, 0, 1, 1], [], []>, precision = #tpu.contract_precision<fp32>} : vector<64x8xf32>, vector<8x16xf32>, vector<64x16xf32> -> vector<64x16xf32>
      %19 = arith.addf %11, %18 : vector<64x16xf32>
      %20 = vector.shape_cast %19 : vector<64x16xf32> to vector<4x16x16xf32>
      %21 = tpu.transpose %20, [0, 2, 1] : vector<4x16x16xf32> -> vector<4x16x16xf32>
      %22 = vector.shape_cast %21 : vector<4x16x16xf32> to vector<64x16xf32>
      %cst_15 = arith.constant dense<0.000000e+00> : vector<64x16xf32>
      %23 = tpu.matmul %22, %0, %cst_15 {dimension_numbers = #tpu.dot_dimension_numbers<[1], [0], [0], [1], [0, 0, 1, 1], [], []>, precision = #tpu.contract_precision<fp32>} : vector<64x16xf32>, vector<16x16xf32>, vector<64x16xf32> -> vector<64x16xf32>
      %24 = vector.shape_cast %23 : vector<64x16xf32> to vector<4x16x16xf32>
      %c2_i32 = arith.constant 2 : i32
      %25 = arith.muli %arg7, %c2_i32 : i32
      %c0_i32_16 = arith.constant 0 : i32
      %26 = arith.addi %25, %c0_i32_16 : i32
      %c0_17 = arith.constant 0 : index
      %c0_18 = arith.constant 0 : index
      %27 = arith.index_cast %26 : i32 to index
      %c0_19 = arith.constant 0 : index
      %c0_20 = arith.constant 0 : index
      %28 = vector.load %arg6[%c0_17, %c0_18, %27, %c0_19, %c0_20] : memref<1x4x16x16x16xf32, #tpu.memory_space<vmem>>, vector<1x4x1x16x16xf32>
      %29 = vector.shape_cast %28 : vector<1x4x1x16x16xf32> to vector<4x16x16xf32>
      %30 = vector.shape_cast %24 : vector<4x16x16xf32> to vector<1x4x1x16x16xf32>
      tpu.vector_store %arg6[%c0_17, %c0_18, %27, %c0_19, %c0_20], %30 {strides = array<i32>} : memref<1x4x16x16x16xf32, #tpu.memory_space<vmem>>, vector<1x4x1x16x16xf32>,
      %c0_21 = arith.constant 0 : index
      %c0_22 = arith.constant 0 : index
      %c1_23 = arith.constant 1 : index
      %c0_24 = arith.constant 0 : index
      %c0_25 = arith.constant 0 : index
      %31 = arith.index_cast %arg7 : i32 to index
      %c0_26 = arith.constant 0 : index
      %c0_27 = arith.constant 0 : index
      %32 = vector.load %arg5[%c0_21, %c0_22, %c1_23, %c0_24, %c0_25, %31, %c0_26, %c0_27] : memref<1x4x2x2x2x8x8x8xf32, #tpu.memory_space<vmem>>, vector<1x4x1x2x2x1x8x8xf32>
      %33 = vector.shape_cast %32 : vector<1x4x1x2x2x1x8x8xf32> to vector<4x2x2x8x8xf32>
      %34 = vector.extract_strided_slice %33 {offsets = [0, 0, 0, 0, 0], sizes = [4, 1, 2, 8, 8], strides = [1, 1, 1, 1, 1]} : vector<4x2x2x8x8xf32> to vector<4x1x2x8x8xf32>
      %35 = vector.shape_cast %34 : vector<4x1x2x8x8xf32> to vector<4x2x8x8xf32>
      %36 = tpu.transpose %35, [0, 1, 3, 2] : vector<4x2x8x8xf32> -> vector<4x2x8x8xf32>
      %37 = vector.shape_cast %36 : vector<4x2x8x8xf32> to vector<64x8xf32>
      %c0_28 = arith.constant 0 : index
      %c0_29 = arith.constant 0 : index
      %c0_30 = arith.constant 0 : index
      %38 = vector.load %arg3[%c0_28, %c0_29, %c0_30] : memref<2x8x16xf32, #tpu.memory_space<vmem>>, vector<1x8x16xf32>
      %39 = vector.shape_cast %38 : vector<1x8x16xf32> to vector<8x16xf32>
      %cst_31 = arith.constant dense<0.000000e+00> : vector<64x16xf32>
      %40 = tpu.matmul %37, %39, %cst_31 {dimension_numbers = #tpu.dot_dimension_numbers<[1], [0], [0], [1], [0, 0, 1, 1], [], []>, precision = #tpu.contract_precision<fp32>} : vector<64x8xf32>, vector<8x16xf32>, vector<64x16xf32> -> vector<64x16xf32>
      %41 = vector.extract_strided_slice %33 {offsets = [0, 1, 0, 0, 0], sizes = [4, 1, 2, 8, 8], strides = [1, 1, 1, 1, 1]} : vector<4x2x2x8x8xf32> to vector<4x1x2x8x8xf32>
      %42 = vector.shape_cast %41 : vector<4x1x2x8x8xf32> to vector<4x2x8x8xf32>
      %43 = tpu.transpose %42, [0, 1, 3, 2] : vector<4x2x8x8xf32> -> vector<4x2x8x8xf32>
      %44 = vector.shape_cast %43 : vector<4x2x8x8xf32> to vector<64x8xf32>
      %c1_32 = arith.constant 1 : index
      %c0_33 = arith.constant 0 : index
      %c0_34 = arith.constant 0 : index
      %45 = vector.load %arg3[%c1_32, %c0_33, %c0_34] : memref<2x8x16xf32, #tpu.memory_space<vmem>>, vector<1x8x16xf32>
      %46 = vector.shape_cast %45 : vector<1x8x16xf32> to vector<8x16xf32>
      %cst_35 = arith.constant dense<0.000000e+00> : vector<64x16xf32>
      %47 = tpu.matmul %44, %46, %cst_35 {dimension_numbers = #tpu.dot_dimension_numbers<[1], [0], [0], [1], [0, 0, 1, 1], [], []>, precision = #tpu.contract_precision<fp32>} : vector<64x8xf32>, vector<8x16xf32>, vector<64x16xf32> -> vector<64x16xf32>
      %48 = arith.addf %40, %47 : vector<64x16xf32>
      %49 = vector.shape_cast %48 : vector<64x16xf32> to vector<4x16x16xf32>
      %50 = tpu.transpose %49, [0, 2, 1] : vector<4x16x16xf32> -> vector<4x16x16xf32>
      %51 = vector.shape_cast %50 : vector<4x16x16xf32> to vector<64x16xf32>
      %cst_36 = arith.constant dense<0.000000e+00> : vector<64x16xf32>
      %52 = tpu.matmul %51, %0, %cst_36 {dimension_numbers = #tpu.dot_dimension_numbers<[1], [0], [0], [1], [0, 0, 1, 1], [], []>, precision = #tpu.contract_precision<fp32>} : vector<64x16xf32>, vector<16x16xf32>, vector<64x16xf32> -> vector<64x16xf32>
      %53 = vector.shape_cast %52 : vector<64x16xf32> to vector<4x16x16xf32>
      %c2_i32_37 = arith.constant 2 : i32
      %54 = arith.muli %arg7, %c2_i32_37 : i32
      %c1_i32_38 = arith.constant 1 : i32
      %55 = arith.addi %54, %c1_i32_38 : i32
      %c0_39 = arith.constant 0 : index
      %c0_40 = arith.constant 0 : index
      %56 = arith.index_cast %55 : i32 to index
      %c0_41 = arith.constant 0 : index
      %c0_42 = arith.constant 0 : index
      %57 = vector.load %arg6[%c0_39, %c0_40, %56, %c0_41, %c0_42] : memref<1x4x16x16x16xf32, #tpu.memory_space<vmem>>, vector<1x4x1x16x16xf32>
      %58 = vector.shape_cast %57 : vector<1x4x1x16x16xf32> to vector<4x16x16xf32>
      %59 = vector.shape_cast %53 : vector<4x16x16xf32> to vector<1x4x1x16x16xf32>
      tpu.vector_store %arg6[%c0_39, %c0_40, %56, %c0_41, %c0_42], %59 {strides = array<i32>} : memref<1x4x16x16x16xf32, #tpu.memory_space<vmem>>, vector<1x4x1x16x16xf32>,
    }
    %c8_i32_1 = arith.constant 8 : i32
    return
  }
  func.func @transform_0(%arg0: i32, %arg1: i32, %arg2: i32) -> (i32, i32, i32) {
    %c0_i32 = arith.constant 0 : i32
    %c0_i32_0 = arith.constant 0 : i32
    %c0_i32_1 = arith.constant 0 : i32
    %c0_i32_2 = arith.constant 0 : i32
    return %c0_i32, %c0_i32_0, %c0_i32_1 : i32, i32, i32
  }
  func.func @transform_1(%arg0: i32, %arg1: i32, %arg2: i32) -> (i32, i32) {
    %c0_i32 = arith.constant 0 : i32
    %c0_i32_0 = arith.constant 0 : i32
    %c0_i32_1 = arith.constant 0 : i32
    return %c0_i32, %c0_i32_0 : i32, i32
  }
  func.func @transform_2(%arg0: i32, %arg1: i32, %arg2: i32) -> (i32, i32, i32, i32, i32, i32, i32, i32) {
    %c0_i32 = arith.constant 0 : i32
    %c0_i32_0 = arith.constant 0 : i32
    %c0_i32_1 = arith.constant 0 : i32
    %c0_i32_2 = arith.constant 0 : i32
    %c0_i32_3 = arith.constant 0 : i32
    %c0_i32_4 = arith.constant 0 : i32
    return %arg0, %arg1, %c0_i32, %c0_i32_0, %c0_i32_1, %arg2, %c0_i32_2, %c0_i32_3 : i32, i32, i32, i32, i32, i32, i32, i32
  }
  func.func @transform_3(%arg0: i32, %arg1: i32, %arg2: i32) -> (i32, i32, i32, i32, i32) {
    %c0_i32 = arith.constant 0 : i32
    %c0_i32_0 = arith.constant 0 : i32
    %c0_i32_1 = arith.constant 0 : i32
    return %arg0, %arg1, %arg2, %c0_i32, %c0_i32_0 : i32, i32, i32, i32, i32
  }
}

</mosaic_0001>

<bundles_post_ra>
// kernel: pixel_shuffle_3d.1
= control target key start
LH: loop header
LB: loop body
LE: loop exit
PB: predicated region body
PF: predicated region fallthrough
CT: control target
= control target key end

     0   :  { %8 = vsyncpa [#allocation3], 0  ;;  %s8620_s0 = inlined_call_operand.vmem [shape: f32[2,8,16], index: 0, kind: input, shape index: {}]   ;;  %s8621_s1 = inlined_call_operand.vmem [shape: f32[16,16], index: 1, kind: input, shape index: {}]   ;;  %s8622_s2 = inlined_call_operand.vmem [shape: f32[2,4,2,2,2,8,8,8], index: 2, kind: input, shape index: {}]   ;;  %s8623_s3 = inlined_call_operand.hbm [shape: f32[2,4,16,16,16], index: 3, kind: output, shape index: {}]  }
   0x1   :  { %10 = vsyncpa [#allocation3 + $0x1], 0  ;;  %s7448_s12 = smov 0   ;;  %s7450_s13 = smov 0  }
   0x2   :  { %s7452_s14 = smov 0   ;;  %s7454_s15 = smov 0  }
   0x3   :  { %s7456_s16 = smov 0   ;;  %s7458_s17 = smov 0  }
   0x4 LB: > { %s6360_s18 = sadd.s32 4294967295, %s7419_s17   ;;  %s6361_s19 = sadd.s32 4294967294, %s7419_s17   ;;  %s7419_s17 = sphi %s7458_s17, %s16_s17   ;;  %s7415_s16 = sphi %s7456_s16, %s8698_s16   ;;  %s7411_s15 = sphi %s7454_s15, %s8697_s15   ;;  %s7407_s14 = sphi %s7452_s14, %s8696_s14   ;;  %s7403_s13 = sphi %s7450_s13, %s8695_s13   ;;  %s7399_s12 = sphi %s7448_s12, %s8694_s12  }
   0x5   : > { %s35_s20 = sadd.s32 1, %s7415_s16  ;;  %s118_s21 = sadd.s32 1, %s7407_s14 }
   0x6   : > { %p37_p0 = scmp.ge.s32.totalorder %s35_s20, 2  ;;  %p128_p1 = scmp.ne.s32.totalorder %s7407_s14, %s7403_s13 }
   0x7   : > { %p129_p2 = scmp.eq.s32.totalorder %s6360_s18, 1  ;;  %p134_p3 = scmp.ne.s32.totalorder %s7403_s13, %s7399_s12 }
   0x8   : > { %s8700_s20 = smov (%p37_p0, %s35_s20), 0  ;;  %p135_p5 = scmp.eq.s32.totalorder %s6361_s19, 1 }
   0x9   : > { %p7488_p4 = por %p129_p2, %p128_p1  ;;  %s111_s23 = ssub.s32 %s7415_s16, %s8700_s20 }
   0xa   : > { %p6364_p6 = scmp.ge.s32.totalorder %s7419_s17, 1  ;;  %p116_p7 = scmp.eq.s32.totalorder %s111_s23, 0 }
   0xb   : > { %p7495_p8 = por %p135_p5, %p134_p3  ;;  %p178_p9 = scmp.lt.s32.totalorder %s7419_s17, 3 }
   0xc   : > { %s7501_s25 = scalar_select %p116_p7, %s7407_s14, %s118_s21  }
   0xd   : > { %p179_p10 = pnand %p6364_p6, %p178_p9 }
   0xf   : > { %182 = sbr.rel (%p179_p10) target bundleno = 1313 (0x521), region = 32 }
  0x14   : > { %s208_s26 = sand.u32 1, %s7403_s13   ;;  %p213_p11 = scmp.lt.s32.totalorder %s7411_s15, 1  ;;  %v7508_v0 = vld [vmem:[%s8621_s1] sm:$0xff]  ;;  %v7513_v1 = vld [vmem:[%s8621_s1 + $0x8] sm:$0xff] }
  0x15   : > { %8640 = vst [vmem:[#allocation5_spill] sm:$0xff] %v7508_v0  ;;  %8641 = vst [vmem:[#allocation6_spill] sm:$0xff] %v7513_v1  ;;  %s7517_s4 = sshll.u32 %s208_s26, 10  ;;  %s7526_s11 = smov 0  }
  0x16   : > { %s214_s5 = scalar_select %p213_p11, %s7411_s15, 1 }
  0x17   : > { %s210_s10 = scalar_lea.vmem [#allocation2], %s7517_s4 }
  0x18   : > { %s6405_s6 = sshll.u32 %s214_s5, 11 }
  0x19   : > { %s7523_s9 = scalar_lea.vmem %s8622_s2, %s6405_s6 }
  0x1a LB: >> { %v6369_v2 = vld [vmem:[%s8620_s0 + $0x8] sm:$0xff]  ;;  %s6368_s21 = sshll.u32 %s7423_s11, 3  ;;  %vm770_vm0 = vcmask 64512   ;;  %v511_v34 = vld [vmem:[%s8620_s0] sm:$0xff]  ;;  %vm2441_vm1 = vcmask 130048   ;;  %s6406_s7 = sshll.u32 %s7423_s11, 5  ;;  %s7423_s11 = sphi %s7526_s11, %s236_s11  }
  0x1b   : >> { %v7534_v3 = vand.u32 4294901760, %v6369_v2  ;;  %s7538_s23 = scalar_lea.vmem %s7523_s9, %s6368_s21  ;;  %v7591_v40 = vand.u32 4294901760, %v511_v34  ;;  %s8298_s8 = scalar_lea.vmem %s210_s10, %s6406_s7 [#allocation2] }
  0x1c   : >> { %v8642_v1 = vld [vmem:[#allocation6_spill] sm:$0xff]  ;;  %v245_v5 = vld [vmem:[%s7538_s23 + $0x280] sm:$0xff]  ;;  %s236_s11 = sadd.s32 1, %s7423_s11  }
  0x1d   : >> { %v7541_v4 = vsub.f32 %v6369_v2, %v7534_v3  ;;  %6745 = vmatprep.subr.mxu0 %v7534_v3  ;;  %v241_v6 = vld [vmem:[%s7538_s23 + $0x80] sm:$0xff]  ;;  %576 = vxpose.xlu1.b32.start.end [1/1] (short) (narrow) %v245_v5, 8  ;;  %v7614_v54 = vsub.f32 %v511_v34, %v7591_v40  ;;  %p233_p12 = scmp.ge.s32.totalorder %s236_s11, 8  }
  0x1e   : >> { %6746 = vmatpush3.msra.mxu0 %v7534_v3  ;;  %512 = vxpose.xlu0.b32.start.end [1/1] (short) (narrow) %v241_v6, 8  ;;  %v246_v8 = vld [vmem:[%s7538_s23 + $0x2c0] sm:$0xff]  ;;  %s6408_s18 = sshll.u32 (%p233_p12), %s7411_s15, 14  ;;  %s6254_s27 = sshll.u32 (%p233_p12), %s210_s10, 4  ;;  %s8571_s27 = int_to_ptr.vmem [resolvable:$true] %s6254_s27 }
  0x1f   : >> { %v7548_v7 = vand.u32 4294901760, %v7541_v4  ;;  %v242_v9 = vld [vmem:[%s7538_s23 + $0xc0] sm:$0xff]  ;;  %6773 = vmatprep.subr.mxu0 %v7541_v4  ;;  %s8575_s11 = scalar_lea.sflag (%p233_p12), [#allocation3], %s208_s26  ;;  %s7339_s9 = scalar_lea.vmem (%p233_p12), %s8571_s27, 16384 }
  0x20   : >> { %v250_v12 = vld [vmem:[%s7538_s23 + $0x4c0] sm:$0xff]  ;;  %p7340_p13 = scmp.ne.s32.totalorder (%p233_p12), %s8571_s27, %s7339_s9  ;;  %s7425_s15 = smov (%p233_p12), [#allocation2]  }
  0x21   : >> { %v975_v10 = vsub.f32 %v7541_v4, %v7548_v7  ;;  %608 = vxpose.xlu1.b32.start.end [1/1] (short) (narrow) %v246_v8, 8  ;;  %v249_v13 = vld [vmem:[%s7538_s23 + $0x480] sm:$0xff]  ;;  %s7343_s28 = sshll.u32 (%p233_p12), %s7425_s15, 4  ;;  %s7344_s28 = int_to_ptr.vmem [resolvable:$false] %s7343_s28 }
  0x22   : >> { %544 = vxpose.xlu0.b32.start.end [1/1] (short) (narrow) %v242_v9, 8  ;;  %v254_v14 = vld [vmem:[%s7538_s23 + $0x6c0] sm:$0xff]  ;;  %p7341_p0 = pnand (%p233_p12), %p7340_p13, %p7488_p4  ;;  %s7345_s29 = scalar_lea.vmem (%p233_p12), %s7344_s28, 32768 }
  0x23   : >> { %v976_v11 = vand.u32 4294901760, %v975_v10  ;;  %v253_v15 = vld [vmem:[%s7538_s23 + $0x680] sm:$0xff]  ;;  %v7636_v10 = vand.u32 4294901760, %v7614_v54  ;;  %p7346_p2 = scmp.lt.s32.totalorder (%p233_p12), %s8571_s27, %s7344_s28  ;;  %p7347_p3 = scmp.lt.s32.totalorder (%p233_p12), %s7345_s29, %s7339_s9 }
  0x24   : >> { %v239_v16 = vld [vmem:[%s7538_s23] sm:$0xff]  ;;  %p7342_p1 = pneg (%p233_p12), %p7341_p0 }
  0x25   : >> { %6759 = vmatprep.subr.mxu1 %v976_v11  ;;  %672 = vxpose.xlu1.b32.start.end [1/1] (short) (narrow) %v250_v12, 8  ;;  %v240_v17 = vld [vmem:[%s7538_s23 + $0x40] sm:$0xff]  ;;  %p7348_p5 = por (%p233_p12), %p7347_p3, %p7346_p2 }
  0x26   : >> { %6760 = vmatpush3.msra.mxu1 %v976_v11  ;;  %640 = vxpose.xlu0.b32.start.end [1/1] (short) (narrow) %v249_v13, 8  ;;  %v243_v18 = vld [vmem:[%s7538_s23 + $0x200] sm:$0xff] }
  0x27   : >> { %6787 = vmatprep.subr.mxu1 %v7534_v3  ;;  %v244_v19 = vld [vmem:[%s7538_s23 + $0x240] sm:$0xff]  ;;  %p7349_p6 = pnand (%p233_p12), %p7348_p5, %p7342_p1 }
  0x28   : >> { %v247_v20 = vld [vmem:[%s7538_s23 + $0x400] sm:$0xff] }
  0x29   : >> { %736 = vxpose.xlu1.b32.start.end [1/1] (short) (narrow) %v254_v14, 8  ;;  %v248_v21 = vld [vmem:[%s7538_s23 + $0x440] sm:$0xff] }
  0x2a   : >> { %704 = vxpose.xlu0.b32.start.end [1/1] (short) (narrow) %v253_v15, 8  ;;  %v251_v22 = vld [vmem:[%s7538_s23 + $0x600] sm:$0xff] }
  0x2b   : >> { %v252_v23 = vld [vmem:[%s7538_s23 + $0x640] sm:$0xff] }
  0x2d   : >> { %287 = vxpose.xlu1.b32.start.end [1/1] (short) (narrow) %v240_v17, 8 }
  0x2e   : >> { %255 = vxpose.xlu0.b32.start.end [1/1] (short) (narrow) %v239_v16, 8 }
  0x31   : >> { %351 = vxpose.xlu1.b32.start.end [1/1] (short) (narrow) %v244_v19, 8 }
  0x32   : >> { %319 = vxpose.xlu0.b32.start.end [1/1] (short) (narrow) %v243_v18, 8 }
  0x35   : >> { %415 = vxpose.xlu1.b32.start.end [1/1] (short) (narrow) %v248_v21, 8 }
  0x36   : >> { %383 = vxpose.xlu0.b32.start.end [1/1] (short) (narrow) %v247_v20, 8  ;;  %v1746_v20 = vsub.f32 %v7614_v54, %v7636_v10 }
  0x39   : >> { %479 = vxpose.xlu1.b32.start.end [1/1] (short) (narrow) %v252_v23, 8 }
  0x3a   : >> { %447 = vxpose.xlu0.b32.start.end [1/1] (short) (narrow) %v251_v22, 8 }
  0x99   : >> { %v592_v24 = vpop.trf.xlu1 }
  0x9a   : >> { %v528_v25 = vpop.trf.xlu0  ;;  %v778_v26 = vsel %vm770_vm0, %v592_v24, 0  ;;  %v1747_v24 = vand.u32 4294901760, %v1746_v20 }
  0x9b   : >> { %v772_v27 = vsel %vm770_vm0, %v528_v25, 0  ;;  %v7570_v28 = vand.u32 4294901760, %v778_v26 }
  0x9c   : >> { %v7572_v29 = vand.u32 4294901760, %v772_v27 }
  0x9d   : >> { %v7575_v30 = vsub.f32 %v778_v26, %v7570_v28  ;;  %v624_v32 = vpop.trf.xlu1 }
  0x9e   : >> { %v7578_v31 = vsub.f32 %v772_v27, %v7572_v29  ;;  %6761 = vmatprep.mubr.f32.mxu1 %v7572_v29  ;;  %v560_v33 = vpop.trf.xlu0  ;;  %v781_v35 = vsel %vm770_vm0, %v624_v32, 0 }
  0x9f   : >> { %v775_v36 = vsel %vm770_vm0, %v560_v33, 0  ;;  %v7586_v37 = vand.u32 4294901760, %v781_v35  ;;  %v883_v41 = vand.u32 4294901760, %v7575_v30 }
  0xa0   : >> { %v7588_v38 = vand.u32 4294901760, %v775_v36  ;;  %v863_v39 = vand.u32 4294901760, %v7578_v31 }
  0xa1   : >> { %v7595_v42 = vsub.f32 %v781_v35, %v7586_v37  ;;  %v688_v44 = vpop.trf.xlu1  ;;  %v884_v60 = vsub.f32 %v7575_v30, %v883_v41 }
  0xa2   : >> { %v7598_v43 = vsub.f32 %v775_v36, %v7588_v38  ;;  %6762 = vmatmul.mubr.f32.vlgmr.msra.gmra.mxu1 %v7588_v38  ;;  %v656_v45 = vpop.trf.xlu0  ;;  %v864_v46 = vsub.f32 %v7578_v31, %v863_v39  ;;  %v787_v47 = vsel %vm770_vm0, %v688_v44, 0 }
  0xa3   : >> { %v784_v48 = vsel %vm770_vm0, %v656_v45, 0  ;;  %6764 = vmatprep.mubr.f32.mxu1 %v7570_v28  ;;  %6788 = vmatpush3.msra.mxu1 %v7534_v3  ;;  %v7607_v50 = vand.u32 4294901760, %v787_v47  ;;  %v893_v52 = vand.u32 4294901760, %v7595_v42  ;;  %v885_v13 = vand.u32 4294901760, %v884_v60 }
  0xa4   : >> { %v873_v49 = vand.u32 4294901760, %v7598_v43  ;;  %v7609_v51 = vand.u32 4294901760, %v784_v48  ;;  %6815 = vmatprep.subr.mxu1 %v7534_v3  ;;  %v865_v53 = vand.u32 4294901760, %v864_v46 }
  0xa5   : >> { %v7617_v55 = vsub.f32 %v787_v47, %v7607_v50  ;;  %v752_v57 = vpop.trf.xlu1  ;;  %v894_v9 = vsub.f32 %v7595_v42, %v893_v52 }
  0xa6   : >> { %v7620_v56 = vsub.f32 %v784_v48, %v7609_v51  ;;  %6765 = vmatmul.mubr.f32.gmra.mxu1 %v7586_v37  ;;  %v720_v58 = vpop.trf.xlu0  ;;  %v874_v59 = vsub.f32 %v7598_v43, %v873_v49  ;;  %v793_v61 = vsel %vm770_vm0, %v752_v57, 0  ;;  %6747 = vmatprep.mubr.f32.mxu0 %v865_v53 }
  0xa7   : >> { %v790_v62 = vsel %vm770_vm0, %v720_v58, 0  ;;  %6767 = vmatprep.mubr.f32.mxu1 %v7609_v51  ;;  %v7629_v2 = vand.u32 4294901760, %v793_v61  ;;  %v913_v6 = vand.u32 4294901760, %v7617_v55  ;;  %v895_v18 = vand.u32 4294901760, %v894_v9 }
  0xa8   : >> { %v903_v63 = vand.u32 4294901760, %v7620_v56  ;;  %v7631_v5 = vand.u32 4294901760, %v790_v62  ;;  %v875_v8 = vand.u32 4294901760, %v874_v59 }
  0xa9   : >> { %v932_v11 = vsub.f32 %v793_v61, %v7629_v2  ;;  %v914_v19 = vsub.f32 %v7617_v55, %v913_v6  ;;  %v303_v27 = vpop.trf.xlu1 }
  0xaa   : >> { %v922_v12 = vsub.f32 %v790_v62, %v7631_v5  ;;  %6768 = vmatmul.mubr.f32.gmra.mxu1 %v7607_v50  ;;  %v904_v14 = vsub.f32 %v7620_v56, %v903_v63  ;;  %6748 = vmatmul.mubr.f32.vlgmr.msra.gmra.mxu0 %v875_v8  ;;  %v271_v26 = vpop.trf.xlu0  ;;  %v1546_v32 = vsel %vm770_vm0, %v303_v27, 0 }
  0xab   : >> { %6770 = vmatprep.mubr.f32.mxu1 %v7631_v5  ;;  %6774 = vmatpush3.msra.mxu0 %v7541_v4  ;;  %v933_v17 = vand.u32 4294901760, %v932_v11  ;;  %v915_v23 = vand.u32 4294901760, %v914_v19  ;;  %v7673_v36 = vand.u32 4294901760, %v1546_v32 }
  0xac   : >> { %v923_v15 = vand.u32 4294901760, %v922_v12  ;;  %6750 = vmatprep.mubr.f32.mxu0 %v885_v13  ;;  %v905_v16 = vand.u32 4294901760, %v904_v14  ;;  %6801 = vmatprep.subr.mxu0 %v7548_v7 }
  0xad   : >> { %v934_v4 = vsub.f32 %v932_v11, %v933_v17  ;;  %v7686_v45 = vsub.f32 %v1546_v32, %v7673_v36 }
  0xae   : >> { %6771 = vmatmul.mubr.f32.gmra.mxu1 %v7629_v2  ;;  %v924_v21 = vsub.f32 %v922_v12, %v923_v15  ;;  %6751 = vmatmul.mubr.f32.gmra.mxu0 %v895_v18 }
  0xaf   : >> { %6789 = vmatprep.mubr.f32.mxu1 %v863_v39  ;;  %6753 = vmatprep.mubr.f32.mxu0 %v905_v16  ;;  %v935_v25 = vand.u32 4294901760, %v934_v4 }
  0xb0   : >> { %v925_v22 = vand.u32 4294901760, %v924_v21 }
  0xb2   : >> { %6790 = vmatmul.mubr.f32.vlgmr.msra.gmra.mxu1 %v873_v49  ;;  %6754 = vmatmul.mubr.f32.gmra.mxu0 %v915_v23 }
  0xb3   : >> { %6792 = vmatprep.mubr.f32.mxu1 %v883_v41  ;;  %6756 = vmatprep.mubr.f32.mxu0 %v925_v22 }
  0xb4   : >> { %6816 = vmatpush3.msra.mxu1 %v7534_v3  ;;  %v335_v3 = vpop.trf.xlu0 }
  0xb5   : >> { %6843 = vmatprep.subr.mxu1 %v1747_v24  ;;  %v1549_v34 = vsel %vm770_vm0, %v335_v3, 0 }
  0xb6   : >> { %6793 = vmatmul.mubr.f32.gmra.mxu1 %v893_v52  ;;  %6757 = vmatmul.mubr.f32.gmra.mxu0 %v935_v25  ;;  %v7676_v41 = vand.u32 4294901760, %v1549_v34  ;;  %v1644_v52 = vand.u32 4294901760, %v7686_v45 }
  0xb7   : >> { %6795 = vmatprep.mubr.f32.mxu1 %v903_v63  ;;  %6775 = vmatprep.mubr.f32.mxu0 %v7578_v31  ;;  %v1543_v31 = vsel %vm770_vm0, %v271_v26, 0 }
  0xb8   : >> { %v399_v33 = vpop.trf.xlu0  ;;  %v1645_v59 = vsub.f32 %v7686_v45, %v1644_v52 }
  0xba   : >> { %6796 = vmatmul.mubr.f32.gmra.mxu1 %v913_v6  ;;  %6776 = vmatmul.mubr.f32.vlgmr.msra.gmra.mxu0 %v7598_v43  ;;  %v1555_v43 = vsel %vm770_vm0, %v399_v33, 0  ;;  %v1646_v8 = vand.u32 4294901760, %v1645_v59 }
  0xbb   : >> { %6798 = vmatprep.mubr.f32.mxu1 %v923_v15  ;;  %6802 = vmatpush3.msra.mxu0 %v7548_v7  ;;  %v367_v7 = vpop.trf.xlu1  ;;  %v7695_v47 = vand.u32 4294901760, %v1555_v43 }
  0xbc   : >> { %6778 = vmatprep.mubr.f32.mxu0 %v7575_v30  ;;  %6829 = vmatprep.subr.mxu0 %v7591_v40  ;;  %v7662_v30 = vand.u32 4294901760, %v1543_v31 }
  0xbe   : >> { %6799 = vmatmul.mubr.f32.gmra.mxu1 %v933_v17  ;;  %6779 = vmatmul.mubr.f32.gmra.mxu0 %v7595_v42  ;;  %v7671_v35 = vsub.f32 %v1543_v31, %v7662_v30  ;;  %v1552_v42 = vsel %vm770_vm0, %v367_v7, 0 }
  0xbf   : >> { %6817 = vmatprep.mubr.f32.mxu1 %v7572_v29  ;;  %6781 = vmatprep.mubr.f32.mxu0 %v7620_v56  ;;  %v431_v39 = vpop.trf.xlu1  ;;  %v7688_v46 = vand.u32 4294901760, %v1552_v42 }
  0xc0   : >> { %v1634_v44 = vand.u32 4294901760, %v7671_v35  ;;  %v1558_v48 = vsel %vm770_vm0, %v431_v39, 0 }
  0xc1   : >> { %v7704_v53 = vsub.f32 %v1552_v42, %v7688_v46 }
  0xc2   : >> { %6818 = vmatmul.mubr.f32.vlgmr.msra.gmra.mxu1 %v7588_v38  ;;  %6782 = vmatmul.mubr.f32.gmra.mxu0 %v7617_v55  ;;  %v7706_v55 = vand.u32 4294901760, %v1558_v48  ;;  %v1635_v56 = vsub.f32 %v7671_v35, %v1634_v44 }
  0xc3   : >> { %6820 = vmatprep.mubr.f32.mxu1 %v7570_v28  ;;  %6784 = vmatprep.mubr.f32.mxu0 %v922_v12  ;;  %v495_v49 = vpop.trf.xlu1  ;;  %v1664_v60 = vand.u32 4294901760, %v7704_v53 }
  0xc4   : >> { %6844 = vmatpush3.msra.mxu1 %v1747_v24  ;;  %v1683_v61 = vsub.f32 %v1558_v48, %v7706_v55  ;;  %v1636_v6 = vand.u32 4294901760, %v1635_v56 }
  0xc5   : >> { %6871 = vmatprep.subr.mxu1 %v7591_v40  ;;  %v1665_v12 = vsub.f32 %v7704_v53, %v1664_v60 }
  0xc6   : >> { %6821 = vmatmul.mubr.f32.gmra.mxu1 %v7586_v37  ;;  %6785 = vmatmul.mubr.f32.gmra.mxu0 %v932_v11  ;;  %v1684_v9 = vand.u32 4294901760, %v1683_v61 }
  0xc7   : >> { %6823 = vmatprep.mubr.f32.mxu1 %v7609_v51  ;;  %6803 = vmatprep.mubr.f32.mxu0 %v7572_v29  ;;  %v463_v29 = vpop.trf.xlu0  ;;  %v1666_v16 = vand.u32 4294901760, %v1665_v12 }
  0xc8   : >> { %v1685_v17 = vsub.f32 %v1683_v61, %v1684_v9 }
  0xca   : >> { %6824 = vmatmul.mubr.f32.gmra.mxu1 %v7607_v50  ;;  %6804 = vmatmul.mubr.f32.vlgmr.msra.gmra.mxu0 %v7588_v38  ;;  %v7692_v38 = vsub.f32 %v1549_v34, %v7676_v41  ;;  %v1686_v20 = vand.u32 4294901760, %v1685_v17 }
  0xcb   : >> { %6826 = vmatprep.mubr.f32.mxu1 %v7631_v5  ;;  %6830 = vmatpush3.msra.mxu0 %v7591_v40 }
  0xcc   : >> { %6806 = vmatprep.mubr.f32.mxu0 %v7570_v28  ;;  %6857 = vmatprep.subr.mxu0 %v7614_v54  ;;  %v1561_v28 = vsel %vm770_vm0, %v463_v29, 0  ;;  %v1654_v57 = vand.u32 4294901760, %v7692_v38 }
  0xcd   : >> { %v7714_v58 = vand.u32 4294901760, %v1561_v28 }
  0xce   : >> { %6827 = vmatmul.mubr.f32.gmra.mxu1 %v7629_v2  ;;  %6807 = vmatmul.mubr.f32.gmra.mxu0 %v7586_v37  ;;  %v7711_v37 = vsub.f32 %v1555_v43, %v7695_v47 }
  0xcf   : >> { %6845 = vmatprep.mubr.f32.mxu1 %v7662_v30  ;;  %6809 = vmatprep.mubr.f32.mxu0 %v7609_v51  ;;  %v1564_v51 = vsel %vm770_vm0, %v495_v49, 0 }
  0xd0   : >> { %v7724_v62 = vand.u32 4294901760, %v1564_v51  ;;  %v1674_v63 = vand.u32 4294901760, %v7711_v37 }
  0xd2   : >> { %6846 = vmatmul.mubr.f32.vlgmr.msra.gmra.mxu1 %v7673_v36  ;;  %6810 = vmatmul.mubr.f32.gmra.mxu0 %v7607_v50  ;;  %v1693_v50 = vsub.f32 %v1561_v28, %v7714_v58  ;;  %v1703_v11 = vsub.f32 %v1564_v51, %v7724_v62  ;;  %v1675_v15 = vsub.f32 %v7711_v37, %v1674_v63 }
  0xd3   : >> { %6848 = vmatprep.mubr.f32.mxu1 %v7676_v41  ;;  %6812 = vmatprep.mubr.f32.mxu0 %v7631_v5  ;;  %v1655_v5 = vsub.f32 %v7692_v38, %v1654_v57 }
  0xd4   : >> { %6872 = vmatpush3.msra.mxu1 %v7591_v40  ;;  %v1694_v13 = vand.u32 4294901760, %v1693_v50  ;;  %v1676_v18 = vand.u32 4294901760, %v1675_v15 }
  0xd5   : >> { %6899 = vmatprep.subr.mxu1 %v7591_v40  ;;  %v1656_v14 = vand.u32 4294901760, %v1655_v5 }
  0xd6   : >> { %6849 = vmatmul.mubr.f32.gmra.mxu1 %v7688_v46  ;;  %6813 = vmatmul.mubr.f32.gmra.mxu0 %v7629_v2  ;;  %v1704_v2 = vand.u32 4294901760, %v1703_v11  ;;  %v1695_v19 = vsub.f32 %v1693_v50, %v1694_v13 }
  0xd7   : >> { %6851 = vmatprep.mubr.f32.mxu1 %v7695_v47  ;;  %6831 = vmatprep.mubr.f32.mxu0 %v1636_v6 }
  0xd8   : >> { %v1705_v21 = vsub.f32 %v1703_v11, %v1704_v2  ;;  %v1696_v22 = vand.u32 4294901760, %v1695_v19 }
  0xda   : >> { %6852 = vmatmul.mubr.f32.gmra.mxu1 %v7706_v55  ;;  %6832 = vmatmul.mubr.f32.vlgmr.msra.gmra.mxu0 %v1646_v8 }
  0xdb   : >> { %6854 = vmatprep.mubr.f32.mxu1 %v7714_v58  ;;  %6858 = vmatpush3.msra.mxu0 %v7614_v54  ;;  %v1706_v54 = vand.u32 4294901760, %v1705_v21 }
  0xdc   : >> { %6834 = vmatprep.mubr.f32.mxu0 %v1656_v14  ;;  %6885 = vmatprep.subr.mxu0 %v7636_v10 }
  0xde   : >> { %6855 = vmatmul.mubr.f32.gmra.mxu1 %v7724_v62  ;;  %6835 = vmatmul.mubr.f32.gmra.mxu0 %v1666_v16 }
  0xdf   : >> { %6873 = vmatprep.mubr.f32.mxu1 %v1634_v44  ;;  %6837 = vmatprep.mubr.f32.mxu0 %v1676_v18 }
  0xe2   : >> { %6874 = vmatmul.mubr.f32.vlgmr.msra.gmra.mxu1 %v1644_v52  ;;  %6838 = vmatmul.mubr.f32.gmra.mxu0 %v1686_v20 }
  0xe3   : >> { %6876 = vmatprep.mubr.f32.mxu1 %v1654_v57  ;;  %6840 = vmatprep.mubr.f32.mxu0 %v1696_v22 }
  0xe4   : >> { %6900 = vmatpush3.msra.mxu1 %v7591_v40 }
  0xe6   : >> { %6877 = vmatmul.mubr.f32.gmra.mxu1 %v1664_v60  ;;  %6841 = vmatmul.mubr.f32.gmra.mxu0 %v1706_v54 }
  0xe7   : >> { %6879 = vmatprep.mubr.f32.mxu1 %v1674_v63  ;;  %6859 = vmatprep.mubr.f32.mxu0 %v7671_v35  ;;  %v7779_v35 = vand.u32 4294901760, %v8642_v1 }
  0xe9   : >> { %8643 = vst [vmem:[#allocation7_spill] sm:$0xff] %v7779_v35 }
  0xea   : >> { %6880 = vmatmul.mubr.f32.gmra.mxu1 %v1684_v9  ;;  %6860 = vmatmul.mubr.f32.vlgmr.msra.gmra.mxu0 %v7686_v45 }
  0xeb   : >> { %6882 = vmatprep.mubr.f32.mxu1 %v1694_v13  ;;  %6886 = vmatpush3.msra.mxu0 %v7636_v10 }
  0xec   : >> { %6862 = vmatprep.mubr.f32.mxu0 %v7692_v38  ;;  %6913 = vmatprep.subr.mxu0 %v7779_v35 }
  0xee   : >> { %6883 = vmatmul.mubr.f32.gmra.mxu1 %v1704_v2  ;;  %6863 = vmatmul.mubr.f32.gmra.mxu0 %v7704_v53 }
  0xef   : >> { %6901 = vmatprep.mubr.f32.mxu1 %v7662_v30  ;;  %6865 = vmatprep.mubr.f32.mxu0 %v7711_v37 }
  0xf2   : >> { %6902 = vmatmul.mubr.f32.vlgmr.msra.gmra.mxu1 %v7673_v36  ;;  %6866 = vmatmul.mubr.f32.gmra.mxu0 %v1683_v61 }
  0xf3   : >> { %6904 = vmatprep.mubr.f32.mxu1 %v7676_v41  ;;  %6868 = vmatprep.mubr.f32.mxu0 %v1693_v50 }
  0xf6   : >> { %6905 = vmatmul.mubr.f32.gmra.mxu1 %v7688_v46  ;;  %6869 = vmatmul.mubr.f32.gmra.mxu0 %v1703_v11 }
  0xf7   : >> { %6907 = vmatprep.mubr.f32.mxu1 %v7695_v47  ;;  %6887 = vmatprep.mubr.f32.mxu0 %v7662_v30 }
  0xfa   : >> { %6908 = vmatmul.mubr.f32.gmra.mxu1 %v7706_v55  ;;  %6888 = vmatmul.mubr.f32.vlgmr.msra.gmra.mxu0 %v7673_v36 }
  0xfb   : >> { %6910 = vmatprep.mubr.f32.mxu1 %v7714_v58  ;;  %6890 = vmatprep.mubr.f32.mxu0 %v7676_v41 }
  0xfc   : >> { %6914 = vmatpush3.msra.mxu0 %v7779_v35 }
  0xfe   : >> { %6911 = vmatmul.mubr.f32.gmra.mxu1 %v7724_v62  ;;  %6891 = vmatmul.mubr.f32.gmra.mxu0 %v7688_v46 }
  0xff   : >> { %6893 = vmatprep.mubr.f32.mxu0 %v7695_v47 }
 0x102   : >> { %6894 = vmatmul.mubr.f32.gmra.mxu0 %v7706_v55 }
 0x103   : >> { %6896 = vmatprep.mubr.f32.mxu0 %v7714_v58 }
 0x106   : >> { %6897 = vmatmul.mubr.f32.gmra.mxu0 %v7724_v62 }
 0x162   : >> { %v6763_v40 = vpop.f32.mrf.mxu1 }
 0x164   : >> { %v7764_v10 = vpop.f32.mrf.mxu1 }
 0x166   : >> { %v6766_v23 = vpop.f32.mrf.mxu1 }
 0x168   : >> { %v7766_v4 = vpop.f32.mrf.mxu1 }
 0x16a   : >> { %v6769_v24 = vpop.f32.mrf.mxu1  ;;  %v6749_v25 = vpop.f32.mrf.mxu0 }
 0x16b   : >> { %v7768_v26 = vadd.f32 %v6763_v40, %v6749_v25 }
 0x16c   : >> { %v7770_v27 = vpop.f32.mrf.mxu1  ;;  %v867_v3 = vpop.f32.mrf.mxu0 }
 0x16e   : >> { %v6772_v31 = vpop.f32.mrf.mxu1  ;;  %v6752_v7 = vpop.f32.mrf.mxu0 }
 0x16f   : >> { %v7772_v30 = vadd.f32 %v6766_v23, %v6752_v7  ;;  %v1014_v7 = vadd.f32 %v7764_v10, %v867_v3 }
 0x170   : >> { %v7774_v32 = vpop.f32.mrf.mxu1  ;;  %v887_v33 = vpop.f32.mrf.mxu0 }
 0x172   : >> { %v7776_v34 = vpop.f32.mrf.mxu1  ;;  %v6755_v36 = vpop.f32.mrf.mxu0 }
 0x173   : >> { %v7781_v39 = vadd.f32 %v6769_v24, %v6755_v36 }
 0x174   : >> { %v1252_v41 = vpop.f32.mrf.mxu1  ;;  %v907_v42 = vpop.f32.mrf.mxu0 }
 0x175   : >> { %v1038_v10 = vadd.f32 %v7770_v27, %v907_v42 }
 0x176   : >> { %v7785_v43 = vpop.f32.mrf.mxu1  ;;  %v6758_v29 = vpop.f32.mrf.mxu0 }
 0x177   : >> { %v7787_v44 = vadd.f32 %v6772_v31, %v6758_v29 }
 0x178   : >> { %v7789_v45 = vpop.f32.mrf.mxu1  ;;  %v7791_v46 = vpop.f32.mrf.mxu0 }
 0x179   : >> { %v1050_v27 = vadd.f32 %v7774_v32, %v7791_v46 }
 0x17a   : >> { %v7793_v38 = vpop.f32.mrf.mxu1  ;;  %v6777_v47 = vpop.f32.mrf.mxu0 }
 0x17c   : >> { %v7795_v48 = vpop.f32.mrf.mxu1  ;;  %v1129_v28 = vpop.f32.mrf.mxu0 }
 0x17e   : >> { %v7797_v49 = vpop.f32.mrf.mxu1  ;;  %v6780_v52 = vpop.f32.mrf.mxu0 }
 0x180   : >> { %v7799_v53 = vpop.f32.mrf.mxu1  ;;  %v1143_v55 = vpop.f32.mrf.mxu0 }
 0x182   : >> { %v7801_v56 = vpop.f32.mrf.mxu1  ;;  %v6783_v57 = vpop.f32.mrf.mxu0 }
 0x184   : >> { %v1496_v37 = vpop.f32.mrf.mxu1  ;;  %v1157_v58 = vpop.f32.mrf.mxu0 }
 0x186   : >> { %v7803_v51 = vpop.f32.mrf.mxu1  ;;  %v7805_v59 = vpop.f32.mrf.mxu0 }
 0x187   : >> { %v1179_v32 = vadd.f32 %v7805_v59, %v7787_v44 }
 0x188   : >> { %v7807_v60 = vpop.f32.mrf.mxu1  ;;  %v1171_v61 = vpop.f32.mrf.mxu0 }
 0x18a   : >> { %v7809_v62 = vpop.f32.mrf.mxu1  ;;  %v6805_v63 = vpop.f32.mrf.mxu0 }
 0x18c   : >> { %v7811_v50 = vpop.f32.mrf.mxu1  ;;  %v1382_v6 = vpop.f32.mrf.mxu0 }
 0x18e   : >> { %v7813_v5 = vpop.f32.mrf.mxu1  ;;  %v6808_v8 = vpop.f32.mrf.mxu0 }
 0x18f   : >> { %8644 = vst [vmem:[#allocation8_spill] sm:$0xff] %v7813_v5 }
 0x190   : >> { %v7815_v9 = vpop.f32.mrf.mxu1  ;;  %v1394_v11 = vpop.f32.mrf.mxu0 }
 0x191   : >> { %8645 = vst [vmem:[#allocation9_spill] sm:$0xff] %v7815_v9 }
 0x192   : >> { %v7817_v12 = vpop.f32.mrf.mxu1  ;;  %v6811_v13 = vpop.f32.mrf.mxu0 }
 0x194   : >> { %v7819_v14 = vpop.f32.mrf.mxu1  ;;  %v1406_v15 = vpop.f32.mrf.mxu0 }
 0x196   : >> { %v7821_v2 = vpop.f32.mrf.mxu1  ;;  %v7823_v16 = vpop.f32.mrf.mxu0 }
 0x197   : >> { %8646 = vst [vmem:[#allocation10_spill] sm:$0xff] %v7821_v2 }
 0x198   : >> { %v7825_v17 = vpop.f32.mrf.mxu1  ;;  %v7827_v18 = vpop.f32.mrf.mxu0 }
 0x19a   : >> { %v7829_v19 = vpop.f32.mrf.mxu1  ;;  %v6833_v20 = vpop.f32.mrf.mxu0 }
 0x19b   : >> { %8647 = vst [vmem:[#allocation11_spill] sm:$0xff] %v7829_v19  ;;  %v1130_v19 = vadd.f32 %v1129_v28, %v1014_v7  ;;  %v1151_v7 = vadd.f32 %v6780_v52, %v7772_v30 }
 0x19c   : >> { %v7831_v21 = vpop.f32.mrf.mxu1  ;;  %v1638_v22 = vpop.f32.mrf.mxu0 }
 0x19d   : >> { %8648 = vst [vmem:[#allocation12_spill] sm:$0xff] %v7831_v21  ;;  %v1026_v21 = vadd.f32 %v7766_v4, %v887_v33 }
 0x19e   : >> { %v7833_v54 = vpop.f32.mrf.mxu1  ;;  %v6836_v40 = vpop.f32.mrf.mxu0 }
 0x19f   : >> { %8649 = vst [vmem:[#allocation13_spill] sm:$0xff] %v7833_v54  ;;  %v1137_v54 = vadd.f32 %v6777_v47, %v7768_v26  ;;  %v1144_v9 = vadd.f32 %v1143_v55, %v1026_v21  ;;  %v1158_v26 = vadd.f32 %v1157_v58, %v1038_v10  ;;  %v1165_v21 = vadd.f32 %v6783_v57, %v7781_v39 }
 0x1a0   : >> { %v7835_v23 = vpop.f32.mrf.mxu1  ;;  %v1658_v24 = vpop.f32.mrf.mxu0 }
 0x1a1   : >> { %8650 = vst [vmem:[#allocation14_spill] sm:$0xff] %v7835_v23  ;;  %v1261_v3 = vadd.f32 %v7776_v34, %v1137_v54  ;;  %v1285_v58 = vadd.f32 %v7795_v48, %v1158_v26  ;;  %v1293_v39 = vadd.f32 %v7793_v38, %v1165_v21 }
 0x1a2   : >> { %v7837_v25 = vpop.f32.mrf.mxu1  ;;  %v7839_v31 = vpop.f32.mrf.mxu0 }
 0x1a3   : >> { %8651 = vst [vmem:[#allocation15_spill] sm:$0xff] %v7837_v25  ;;  %8652 = vst [vmem:[#allocation16_spill] sm:$0xff] %v7839_v31  ;;  %v1253_v31 = vadd.f32 %v1252_v41, %v1130_v19  ;;  %v1389_v47 = vadd.f32 %v6805_v63, %v1261_v3  ;;  %v1277_v19 = vadd.f32 %v7785_v43, %v1151_v7 }
 0x1a4   : >> { %v7842_v36 = vpop.f32.mrf.mxu1  ;;  %v1678_v29 = vpop.f32.mrf.mxu0  ;;  %v1407_v46 = vadd.f32 %v1406_v15, %v1285_v58 }
 0x1a5   : >> { %v1383_v4 = vadd.f32 %v1382_v6, %v1253_v31  ;;  %v1172_v6 = vadd.f32 %v1171_v61, %v1050_v27  ;;  %v1413_v61 = vadd.f32 %v6811_v13, %v1293_v39  ;;  %v8662_v27 = vld [vmem:[#allocation8_spill] sm:$0xff] }
 0x1a6   : >> { %v7844_v5 = vpop.f32.mrf.mxu1  ;;  %v7848_v2 = vpop.f32.mrf.mxu0  ;;  %v1521_v44 = vadd.f32 %v7811_v50, %v1407_v46  ;;  %v7894_v50 = vsub.f32 %v8642_v1, %v7779_v35 }
 0x1a7   : >> { %8653 = vst [vmem:[#allocation17_spill] sm:$0xff] %v7844_v5  ;;  %v1269_v5 = vadd.f32 %v7789_v45, %v1144_v9  ;;  %v1497_v30 = vadd.f32 %v1496_v37, %v1383_v4  ;;  %v1503_v45 = vadd.f32 %v7801_v56, %v1389_v47  ;;  %v1401_v9 = vadd.f32 %v6808_v8, %v1277_v19 }
 0x1a8   : >> { %v7850_v23 = vpop.f32.mrf.mxu1  ;;  %v7852_v25 = vpop.f32.mrf.mxu0  ;;  %v1301_v48 = vadd.f32 %v7799_v53, %v1172_v6  ;;  %v1527_v53 = vadd.f32 %v7809_v62, %v1413_v61  ;;  %8654 = vst [vmem:[#allocation18_spill] sm:$0xff] %v7894_v50 }
 0x1a9   : >> { %v1395_v42 = vadd.f32 %v1394_v11, %v1269_v5  ;;  %v1639_v57 = vadd.f32 %v1638_v22, %v1497_v30  ;;  %v1649_v43 = vadd.f32 %v6833_v20, %v1503_v45  ;;  %v1515_v8 = vadd.f32 %v7803_v51, %v1401_v9  ;;  %v8663_v30 = vld [vmem:[#allocation12_spill] sm:$0xff] }
 0x1aa   : >> { %v7854_v0 = vpop.f32.mrf.mxu1  ;;  %v6861_v28 = vpop.f32.mrf.mxu0  ;;  %v1309_v22 = vadd.f32 %v7797_v49, %v1179_v32  ;;  %v1419_v10 = vadd.f32 %v7827_v18, %v1301_v48  ;;  %v8657_v7 = vld [vmem:[#allocation16_spill] sm:$0xff]  ;;  %v8664_v58 = vld [vmem:[#allocation15_spill] sm:$0xff] }
 0x1ab   : >> { %v1509_v37 = vadd.f32 %v7807_v60, %v1395_v42  ;;  %v1785_v38 = vadd.f32 %v7819_v14, %v1639_v57  ;;  %v1791_v59 = vadd.f32 %v7817_v12, %v1649_v43  ;;  %v1669_v15 = vadd.f32 %v6836_v40, %v1515_v8  ;;  %v8655_v12 = vld [vmem:[#allocation5_spill] sm:$0xff] }
 0x1ac   : >> { %v7859_v33 = vpop.f32.mrf.mxu1  ;;  %v1900_v55 = vpop.f32.mrf.mxu0  ;;  %v1425_v51 = vadd.f32 %v7823_v16, %v1309_v22  ;;  %v7897_v18 = vand.u32 4294901760, %v8655_v12  ;;  %v1689_v4 = vadd.f32 %v8657_v7, %v1527_v53  ;;  %v8658_v40 = vld [vmem:[#allocation9_spill] sm:$0xff]  ;;  %v8659_v16 = vld [vmem:[#allocation10_spill] sm:$0xff] }
 0x1ad   : >> { %v1659_v56 = vadd.f32 %v1658_v24, %v1509_v37  ;;  %v1901_v20 = vadd.f32 %v1900_v55, %v1785_v38  ;;  %v1679_v24 = vadd.f32 %v1678_v29, %v1521_v44  ;;  %v1908_v14 = vadd.f32 %v6861_v28, %v1791_v59  ;;  %v8667_v22 = vld [vmem:[#allocation14_spill] sm:$0xff] }
 0x1ae   : >> { %v7863_v41 = vpop.f32.mrf.mxu1  ;;  %v6864_v34 = vpop.f32.mrf.mxu0  ;;  %8656 = vst [vmem:[#allocation19_spill] sm:$0xff] %v7897_v18  ;;  %v1533_v26 = vadd.f32 %v8658_v40, %v1419_v10  ;;  %v1803_v29 = vadd.f32 %v8659_v16, %v1669_v15  ;;  %v7908_v21 = vsub.f32 %v8655_v12, %v7897_v18  ;;  %6915 = vmatprep.subr.mxu0 %v7897_v18  ;;  %v8668_v15 = vld [vmem:[#allocation17_spill] sm:$0xff] }
 0x1af   : >> { %v1797_v49 = vadd.f32 %v7825_v17, %v1659_v56  ;;  %v2024_v28 = vadd.f32 %v7842_v36, %v1901_v20  ;;  %v7904_v17 = vand.u32 4294901760, %v7894_v50  ;;  %v1539_v42 = vadd.f32 %v8662_v27, %v1425_v51  ;;  %6916 = vmatpush3.msra.mxu0 %v7897_v18 }
 0x1b0   : >> { %v7868_v52 = vpop.f32.mrf.mxu1  ;;  %v1914_v63 = vpop.f32.mrf.mxu0  ;;  %8661 = vst [vmem:[#allocation9_spill] sm:$0xff] %v7908_v21  ;;  %v1699_v19 = vadd.f32 %v7852_v25, %v1533_v26  ;;  %v1809_v6 = vadd.f32 %v8663_v30, %v1679_v24  ;;  %v2032_v45 = vadd.f32 %v8664_v58, %v1908_v14  ;;  %v1922_v36 = vadd.f32 %v6864_v34, %v1803_v29  ;;  %v8666_v25 = vld [vmem:[#allocation11_spill] sm:$0xff]  ;;  %v6379_v30 = vld [vmem:[%s7538_s23 + $0x380] sm:$0xff] }
 0x1b1   : >> { %v1915_v62 = vadd.f32 %v1914_v63, %v1797_v49  ;;  %8660 = vst [vmem:[#allocation16_spill] sm:$0xff] %v7904_v17  ;;  %v2645_v39 = vsub.f32 %v7894_v50, %v7904_v17  ;;  %v7919_v57 = vand.u32 4294901760, %v7908_v21  ;;  %6945 = vmatprep.subr.mxu0 %v7894_v50  ;;  %v1709_v32 = vadd.f32 %v7848_v2, %v1539_v42  ;;  %v6383_v58 = vld [vmem:[%s7538_s23 + $0x580] sm:$0xff] }
 0x1b2   : >> { %v7873_v54 = vpop.f32.mrf.mxu1  ;;  %v6867_v5 = vpop.f32.mrf.mxu0  ;;  %v1815_v46 = vadd.f32 %v8666_v25, %v1689_v4  ;;  %v1821_v10 = vadd.f32 %v8667_v22, %v1699_v19  ;;  %v2048_v2 = vadd.f32 %v8668_v15, %v1922_v36  ;;  %v6388_v36 = vld [vmem:[%s7538_s23 + $0x7c0] sm:$0xff] }
 0x1b3   : >> { %8665 = vst [vmem:[#allocation10_spill] sm:$0xff] %v7919_v57  ;;  %v2040_v48 = vadd.f32 %v7850_v23, %v1915_v62  ;;  %v7925_v8 = vand.u32 4294901760, %v2645_v39  ;;  %v2652_v38 = vsub.f32 %v7908_v21, %v7919_v57  ;;  %v8669_v23 = vld [vmem:[#allocation13_spill] sm:$0xff] }
 0x1b4   : >> { %v2267_v11 = vpop.f32.mrf.mxu1  ;;  %v1928_v31 = vpop.f32.mrf.mxu0  ;;  %v1936_v59 = vadd.f32 %v6867_v5, %v1815_v46  ;;  %v1827_v20 = vadd.f32 %v8669_v23, %v1709_v32  ;;  %v6374_v39 = vld [vmem:[%s7538_s23 + $0x140] sm:$0xff] }
 0x1b5   : >> { %v1929_v43 = vadd.f32 %v1928_v31, %v1809_v6  ;;  %6929 = vmatprep.subr.mxu1 %v7925_v8  ;;  %v7932_v31 = vand.u32 4294901760, %v2652_v38  ;;  %v6380_v6 = vld [vmem:[%s7538_s23 + $0x3c0] sm:$0xff] }
 0x1b6   : >> { %v7885_v60 = vpop.f32.mrf.mxu0  ;;  %v7887_v13 = vpop.f32.mrf.mxu1  ;;  %6930 = vmatpush3.msra.mxu1 %v7925_v8  ;;  %v2064_v26 = vadd.f32 %v7854_v0, %v1936_v59  ;;  %v6377_v32 = vld [vmem:[%s7538_s23 + $0x300] sm:$0xff] }
 0x1b7   : >> { %v2056_v24 = vadd.f32 %v7859_v33, %v1929_v43  ;;  %6931 = vmatprep.subr.mxu1 %v7932_v31  ;;  %v1950_v40 = vadd.f32 %v7885_v60, %v1827_v20  ;;  %v6378_v25 = vld [vmem:[%s7538_s23 + $0x340] sm:$0xff] }
 0x1b8   : >> { %v1942_v3 = vpop.f32.mrf.mxu0  ;;  %v2279_v47 = vpop.f32.mrf.mxu1  ;;  %6932 = vmatpush3.msra.mxu1 %v7932_v31  ;;  %v6381_v46 = vld [vmem:[%s7538_s23 + $0x500] sm:$0xff] }
 0x1b9   : >> { %v1943_v14 = vadd.f32 %v1942_v3, %v1821_v10  ;;  %6961 = vmatprep.subr.mxu1 %v7779_v35  ;;  %v2080_v60 = vadd.f32 %v7863_v41, %v1950_v40  ;;  %v6376_v41 = vld [vmem:[%s7538_s23 + $0x1c0] sm:$0xff] }
 0x1ba   : >> { %v6889_v55 = vpop.f32.mrf.mxu0  ;;  %v6909_v37 = vpop.f32.mrf.mxu1  ;;  %v6382_v43 = vld [vmem:[%s7538_s23 + $0x540] sm:$0xff] }
 0x1bb   : >> { %v2160_v56 = vadd.f32 %v6889_v55, %v2032_v45  ;;  %v6384_v45 = vld [vmem:[%s7538_s23 + $0x5c0] sm:$0xff] }
 0x1bc   : >> { %v2153_v63 = vpop.f32.mrf.mxu0 }
 0x1bd   : >> { %v2154_v9 = vadd.f32 %v2153_v63, %v2024_v28  ;;  %v2274_v49 = vadd.f32 %v7873_v54, %v2160_v56  ;;  %v6387_v63 = vld [vmem:[%s7538_s23 + $0x780] sm:$0xff] }
 0x1be   : >> { %v6892_v61 = vpop.f32.mrf.mxu0 }
 0x1bf   : >> { %v2268_v34 = vadd.f32 %v2267_v11, %v2154_v9  ;;  %v2291_v11 = vpop.f32.mrf.mxu1  ;;  %v2172_v5 = vadd.f32 %v6892_v61, %v2048_v2  ;;  %v6373_v9 = vld [vmem:[%s7538_s23 + $0x100] sm:$0xff] }
 0x1c0   : >> { %v2165_v44 = vpop.f32.mrf.mxu0  ;;  %v6386_v61 = vld [vmem:[%s7538_s23 + $0x740] sm:$0xff] }
 0x1c1   : >> { %v2166_v53 = vadd.f32 %v2165_v44, %v2040_v48  ;;  %2313 = vxpose.xlu0.b32.start [1/2] (short) (narrow) %v2268_v34, 16  ;;  %v6912_v33 = vpop.f32.mrf.mxu1  ;;  %v2286_v54 = vadd.f32 %v7887_v13, %v2172_v5 }
 0x1c2   : >> { %v6895_v51 = vpop.f32.mrf.mxu0 }
 0x1c3   : >> { %v2280_v7 = vadd.f32 %v2279_v47, %v2166_v53  ;;  %v2184_v3 = vadd.f32 %v6895_v51, %v2064_v26  ;;  %v2072_v47 = vadd.f32 %v7868_v52, %v1943_v14  ;;  %v2303_v28 = vpop.f32.mrf.mxu1  ;;  %v6375_v52 = vld [vmem:[%s7538_s23 + $0x180] sm:$0xff]  ;;  %v6389_v14 = vld [vmem:[%s8620_s0 + $0x8] sm:$0xff] }
 0x1c4   : >> { %v2177_v4 = vpop.f32.mrf.mxu0 }
 0x1c5   : >> { %v2178_v62 = vadd.f32 %v2177_v4, %v2056_v24  ;;  %2345 = vxpose.xlu1.b32.start [1/2] (short) (narrow) %v2280_v7, 16  ;;  %2314 = vxpose.xlu0.b32.end [2/2] (short) (narrow) %v2274_v49, 16  ;;  %v2298_v27 = vadd.f32 %v6909_v37, %v2184_v3  ;;  %v6385_v37 = vld [vmem:[%s7538_s23 + $0x700] sm:$0xff]  ;;  %s8567_s23 = scalar_lea.hbm (%p233_p12), %s8623_s3, %s6408_s18 }
 0x1c6   : >> { %v6898_v55 = vpop.f32.mrf.mxu0 }
 0x1c7   : >> { %v2292_v16 = vadd.f32 %v2291_v11, %v2178_v62  ;;  %v2196_v42 = vadd.f32 %v6898_v55, %v2080_v60 }
 0x1c8   : >> { %v2189_v29 = vpop.f32.mrf.mxu0 }
 0x1c9   : >> { %v2190_v0 = vadd.f32 %v2189_v29, %v2072_v47  ;;  %2346 = vxpose.xlu1.b32.end [2/2] (short) (narrow) %v2286_v54, 16  ;;  %2377 = vxpose.xlu0.b32.start [1/2] (short) (narrow) %v2292_v16, 16  ;;  %v2310_v13 = vadd.f32 %v6912_v33, %v2196_v42  ;;  %v8001_v33 = vand.u32 4294901760, %v6389_v14 }
 0x1cb   : >> { %v2304_v19 = vadd.f32 %v2303_v28, %v2190_v0 }
 0x1cd   : >> { %2378 = vxpose.xlu0.b32.end [2/2] (short) (narrow) %v2298_v27, 16  ;;  %2409 = vxpose.xlu1.b32.start [1/2] (short) (narrow) %v2304_v19, 16 }
 0x1d1   : >> { %2410 = vxpose.xlu1.b32.end [2/2] (short) (narrow) %v2310_v13, 16  ;;  %3512 = vxpose.xlu0.b32.start.end [1/1] (short) (narrow) %v6375_v52, 8 }
 0x1d5   : >> { %3544 = vxpose.xlu1.b32.start.end [1/1] (short) (narrow) %v6376_v41, 8  ;;  %3576 = vxpose.xlu0.b32.start.end [1/1] (short) (narrow) %v6379_v30, 8  ;;  %v8023_v41 = vsub.f32 %v6389_v14, %v8001_v33 }
 0x1d9   : >> { %3608 = vxpose.xlu1.b32.start.end [1/1] (short) (narrow) %v6380_v6, 8  ;;  %3640 = vxpose.xlu0.b32.start.end [1/1] (short) (narrow) %v6383_v58, 8 }
 0x1dd   : >> { %3672 = vxpose.xlu1.b32.start.end [1/1] (short) (narrow) %v6384_v45, 8  ;;  %3704 = vxpose.xlu0.b32.start.end [1/1] (short) (narrow) %v6387_v63, 8 }
 0x1e1   : >> { %3736 = vxpose.xlu1.b32.start.end [1/1] (short) (narrow) %v6388_v36, 8  ;;  %3255 = vxpose.xlu0.b32.start.end [1/1] (short) (narrow) %v6373_v9, 8 }
 0x1e5   : >> { %3287 = vxpose.xlu1.b32.start.end [1/1] (short) (narrow) %v6374_v39, 8  ;;  %3319 = vxpose.xlu0.b32.start.end [1/1] (short) (narrow) %v6377_v32, 8 }
 0x1e9   : >> { %3351 = vxpose.xlu1.b32.start.end [1/1] (short) (narrow) %v6378_v25, 8  ;;  %3383 = vxpose.xlu0.b32.start.end [1/1] (short) (narrow) %v6381_v46, 8 }
 0x1ed   : >> { %3415 = vxpose.xlu1.b32.start.end [1/1] (short) (narrow) %v6382_v43, 8  ;;  %3447 = vxpose.xlu0.b32.start.end [1/1] (short) (narrow) %v6385_v37, 8  ;;  %v8038_v43 = vand.u32 4294901760, %v8023_v41 }
 0x1f1   : >> { %3479 = vxpose.xlu1.b32.start.end [1/1] (short) (narrow) %v6386_v61, 8 }
 0x23d   : >> { %v2329_v48 = vpop.trf.xlu0 }
 0x23e   : >> { %v2443_v56 = vsel %vm2441_vm1, %v2329_v48, 0 }
 0x23f   : >> { %v7963_v34 = vand.u32 4294901760, %v2443_v56 }
 0x241   : >> { %v7966_v38 = vsub.f32 %v2443_v56, %v7963_v34  ;;  %v2361_v22 = vpop.trf.xlu1  ;;  %6933 = vmatprep.mubr.f32.mxu1 %v7963_v34  ;;  %v2330_v10 = vpop.trf.xlu0 }
 0x242   : >> { %v2449_v44 = vsel %vm2441_vm1, %v2361_v22, 0  ;;  %v2446_v59 = vsel %vm2441_vm1, %v2330_v10, 0 }
 0x243   : >> { %v2535_v15 = vand.u32 4294901760, %v7966_v38  ;;  %v7972_v2 = vand.u32 4294901760, %v2449_v44  ;;  %v7974_v53 = vand.u32 4294901760, %v2446_v59 }
 0x245   : >> { %v7977_v23 = vsub.f32 %v2449_v44, %v7972_v2  ;;  %v7980_v20 = vsub.f32 %v2446_v59, %v7974_v53  ;;  %v2362_v11 = vpop.trf.xlu1  ;;  %6934 = vmatmul.mubr.f32.vlgmr.msra.gmra.mxu1 %v7974_v53  ;;  %v2393_v51 = vpop.trf.xlu0  ;;  %v2536_v24 = vsub.f32 %v7966_v38, %v2535_v15  ;;  %v3973_v44 = vsub.f32 %v8023_v41, %v8038_v43 }
 0x246   : >> { %v2452_v49 = vsel %vm2441_vm1, %v2362_v11, 0  ;;  %v2455_v5 = vsel %vm2441_vm1, %v2393_v51, 0  ;;  %6936 = vmatprep.mubr.f32.mxu1 %v7972_v2  ;;  %6962 = vmatpush3.msra.mxu1 %v7779_v35 }
 0x247   : >> { %v2555_v7 = vand.u32 4294901760, %v7977_v23  ;;  %v2545_v4 = vand.u32 4294901760, %v7980_v20  ;;  %v7995_v40 = vand.u32 4294901760, %v2452_v49  ;;  %v7997_v26 = vand.u32 4294901760, %v2455_v5  ;;  %6963 = vmatprep.subr.mxu1 %v7897_v18 }
 0x248   : >> { %v2537_v62 = vand.u32 4294901760, %v2536_v24  ;;  %6964 = vmatpush3.msra.mxu1 %v7897_v18 }
 0x249   : >> { %v2546_v55 = vsub.f32 %v7980_v20, %v2545_v4  ;;  %v8005_v54 = vsub.f32 %v2452_v49, %v7995_v40  ;;  %v8008_v3 = vsub.f32 %v2455_v5, %v7997_v26  ;;  %6937 = vmatmul.mubr.f32.gmra.mxu1 %v7995_v40  ;;  %v2394_v47 = vpop.trf.xlu0  ;;  %v2425_v16 = vpop.trf.xlu1  ;;  %v2556_v29 = vsub.f32 %v7977_v23, %v2555_v7 }
 0x24a   : >> { %6917 = vmatprep.mubr.f32.mxu0 %v2537_v62  ;;  %v2458_v60 = vsel %vm2441_vm1, %v2394_v47, 0  ;;  %v2461_v0 = vsel %vm2441_vm1, %v2425_v16, 0  ;;  %6939 = vmatprep.mubr.f32.mxu1 %v7997_v26 }
 0x24b   : >> { %v2547_v28 = vand.u32 4294901760, %v2546_v55  ;;  %v2565_v27 = vand.u32 4294901760, %v8005_v54  ;;  %v2575_v42 = vand.u32 4294901760, %v8008_v3  ;;  %v8017_v19 = vand.u32 4294901760, %v2458_v60  ;;  %6993 = vmatprep.subr.mxu1 %v7779_v35 }
 0x24c   : >> { %v8020_v52 = vand.u32 4294901760, %v2461_v0  ;;  %v2557_v13 = vand.u32 4294901760, %v2556_v29 }
 0x24d   : >> { %v2584_v30 = vsub.f32 %v2458_v60, %v8017_v19  ;;  %6918 = vmatmul.mubr.f32.vlgmr.msra.gmra.mxu0 %v2547_v28  ;;  %6940 = vmatmul.mubr.f32.gmra.mxu1 %v8017_v19  ;;  %v2426_v6 = vpop.trf.xlu1  ;;  %v2566_v58 = vsub.f32 %v8005_v54, %v2565_v27  ;;  %v2576_v45 = vsub.f32 %v8008_v3, %v2575_v42  ;;  %v3528_v51 = vpop.trf.xlu0 }
 0x24e   : >> { %v2594_v63 = vsub.f32 %v2461_v0, %v8020_v52  ;;  %6946 = vmatpush3.msra.mxu0 %v7894_v50  ;;  %v2464_v36 = vsel %vm2441_vm1, %v2426_v6, 0  ;;  %6920 = vmatprep.mubr.f32.mxu0 %v2557_v13 }
 0x24f   : >> { %v2585_v9 = vand.u32 4294901760, %v2584_v30  ;;  %v8032_v39 = vand.u32 4294901760, %v2464_v36  ;;  %6942 = vmatprep.mubr.f32.mxu1 %v8020_v52  ;;  %v2567_v32 = vand.u32 4294901760, %v2566_v58  ;;  %v2577_v25 = vand.u32 4294901760, %v2576_v45  ;;  %6947 = vmatprep.subr.mxu0 %v7908_v21 }
 0x250   : >> { %v2595_v46 = vand.u32 4294901760, %v2594_v63  ;;  %6948 = vmatpush3.msra.mxu0 %v7908_v21 }
 0x251   : >> { %v2604_v37 = vsub.f32 %v2464_v36, %v8032_v39  ;;  %6921 = vmatmul.mubr.f32.gmra.mxu0 %v2567_v32  ;;  %6943 = vmatmul.mubr.f32.gmra.mxu1 %v8032_v39  ;;  %v2586_v61 = vsub.f32 %v2584_v30, %v2585_v9  ;;  %v3560_v24 = vpop.trf.xlu1 }
 0x252   : >> { %6923 = vmatprep.mubr.f32.mxu0 %v2577_v25  ;;  %6965 = vmatprep.mubr.f32.mxu1 %v2535_v15  ;;  %v2596_v48 = vsub.f32 %v2594_v63, %v2595_v46  ;;  %v3974_v15 = vand.u32 4294901760, %v3973_v44  ;;  %v3773_v49 = vsel %vm770_vm0, %v3560_v24, 0 }
 0x253   : >> { %v2605_v56 = vand.u32 4294901760, %v2604_v37  ;;  %v2587_v22 = vand.u32 4294901760, %v2586_v61  ;;  %6977 = vmatprep.subr.mxu0 %v7904_v17  ;;  %v8074_v62 = vand.u32 4294901760, %v3773_v49 }
 0x254   : >> { %v2597_v10 = vand.u32 4294901760, %v2596_v48 }
 0x255   : >> { %6924 = vmatmul.mubr.f32.gmra.mxu0 %v2587_v22  ;;  %6966 = vmatmul.mubr.f32.vlgmr.msra.gmra.mxu1 %v2545_v4  ;;  %v2606_v59 = vsub.f32 %v2604_v37, %v2605_v56  ;;  %v8086_v29 = vsub.f32 %v3773_v49, %v8074_v62 }
 0x256   : >> { %6926 = vmatprep.mubr.f32.mxu0 %v2597_v10  ;;  %6968 = vmatprep.mubr.f32.mxu1 %v2555_v7 }
 0x257   : >> { %v2607_v11 = vand.u32 4294901760, %v2606_v59  ;;  %6994 = vmatpush3.msra.mxu1 %v7779_v35 }
 0x258   : >> { %6995 = vmatprep.subr.mxu1 %v7897_v18 }
 0x259   : >> { %6927 = vmatmul.mubr.f32.gmra.mxu0 %v2607_v11  ;;  %6969 = vmatmul.mubr.f32.gmra.mxu1 %v2565_v27 }
 0x25a   : >> { %6949 = vmatprep.mubr.f32.mxu0 %v7966_v38  ;;  %6971 = vmatprep.mubr.f32.mxu1 %v2575_v42  ;;  %v3592_v38 = vpop.trf.xlu0 }
 0x25b   : >> { %6996 = vmatpush3.msra.mxu1 %v7897_v18  ;;  %v3776_v7 = vsel %vm770_vm0, %v3592_v38, 0 }
 0x25c   : >> { %7023 = vmatprep.subr.mxu1 %v3974_v15 }
 0x25d   : >> { %6950 = vmatmul.mubr.f32.vlgmr.msra.gmra.mxu0 %v7980_v20  ;;  %6972 = vmatmul.mubr.f32.gmra.mxu1 %v2585_v9  ;;  %v3770_v20 = vsel %vm770_vm0, %v3528_v51, 0 }
 0x25e   : >> { %6978 = vmatpush3.msra.mxu0 %v7904_v17  ;;  %6952 = vmatprep.mubr.f32.mxu0 %v7977_v23  ;;  %v3624_v23 = vpop.trf.xlu1  ;;  %v8063_v14 = vand.u32 4294901760, %v3770_v20  ;;  %v3656_v5 = vpop.trf.xlu0 }
 0x25f   : >> { %6974 = vmatprep.mubr.f32.mxu1 %v2595_v46  ;;  %6979 = vmatprep.subr.mxu0 %v7919_v57  ;;  %v3782_v47 = vsel %vm770_vm0, %v3656_v5, 0 }
 0x260   : >> { %6980 = vmatpush3.msra.mxu0 %v7919_v57  ;;  %v8072_v4 = vsub.f32 %v3770_v20, %v8063_v14 }
 0x261   : >> { %6953 = vmatmul.mubr.f32.gmra.mxu0 %v8005_v54  ;;  %6975 = vmatmul.mubr.f32.gmra.mxu1 %v2605_v56  ;;  %v8076_v54 = vand.u32 4294901760, %v3776_v7 }
 0x262   : >> { %6955 = vmatprep.mubr.f32.mxu0 %v8008_v3  ;;  %6997 = vmatprep.mubr.f32.mxu1 %v7963_v34  ;;  %v3688_v55 = vpop.trf.xlu1  ;;  %v3779_v3 = vsel %vm770_vm0, %v3624_v23, 0  ;;  %v3861_v16 = vand.u32 4294901760, %v8072_v4 }
 0x263   : >> { %7009 = vmatprep.subr.mxu0 %v8001_v33  ;;  %v8089_v60 = vand.u32 4294901760, %v3779_v3  ;;  %v8096_v0 = vsub.f32 %v3776_v7, %v8076_v54  ;;  %v3785_v28 = vsel %vm770_vm0, %v3688_v55, 0 }
 0x264   : >> { %v8112_v58 = vand.u32 4294901760, %v3785_v28 }
 0x265   : >> { %6956 = vmatmul.mubr.f32.gmra.mxu0 %v2584_v30  ;;  %6998 = vmatmul.mubr.f32.vlgmr.msra.gmra.mxu1 %v7974_v53  ;;  %v3871_v30 = vand.u32 4294901760, %v8086_v29  ;;  %v8110_v6 = vsub.f32 %v3779_v3, %v8089_v60  ;;  %v3881_v45 = vand.u32 4294901760, %v8096_v0 }
 0x266   : >> { %6958 = vmatprep.mubr.f32.mxu0 %v2594_v63  ;;  %7000 = vmatprep.mubr.f32.mxu1 %v7972_v2  ;;  %v3752_v42 = vpop.trf.xlu1  ;;  %v8134_v46 = vsub.f32 %v3785_v28, %v8112_v58 }
 0x267   : >> { %7024 = vmatpush3.msra.mxu1 %v3974_v15  ;;  %v3791_v36 = vsel %vm770_vm0, %v3752_v42, 0  ;;  %v3872_v32 = vsub.f32 %v8086_v29, %v3871_v30  ;;  %v3891_v25 = vand.u32 4294901760, %v8110_v6  ;;  %v3882_v48 = vsub.f32 %v8096_v0, %v3881_v45 }
 0x268   : >> { %7051 = vmatprep.subr.mxu1 %v8001_v33  ;;  %v3911_v22 = vand.u32 4294901760, %v8134_v46 }
 0x269   : >> { %6959 = vmatmul.mubr.f32.gmra.mxu0 %v2604_v37  ;;  %7001 = vmatmul.mubr.f32.gmra.mxu1 %v7995_v40  ;;  %v8136_v37 = vand.u32 4294901760, %v3791_v36  ;;  %v3873_v56 = vand.u32 4294901760, %v3872_v32  ;;  %v3892_v44 = vsub.f32 %v8110_v6, %v3891_v25  ;;  %v3883_v11 = vand.u32 4294901760, %v3882_v48 }
 0x26a   : >> { %6981 = vmatprep.mubr.f32.mxu0 %v7963_v34  ;;  %7003 = vmatprep.mubr.f32.mxu1 %v7997_v26  ;;  %v3720_v34 = vpop.trf.xlu0  ;;  %v3912_v38 = vsub.f32 %v8134_v46, %v3911_v22 }
 0x26b   : >> { %v3788_v27 = vsel %vm770_vm0, %v3720_v34, 0  ;;  %v3930_v10 = vsub.f32 %v3791_v36, %v8136_v37  ;;  %v3893_v24 = vand.u32 4294901760, %v3892_v44  ;;  %v3303_v34 = vpop.trf.xlu1 }
 0x26d   : >> { %6982 = vmatmul.mubr.f32.vlgmr.msra.gmra.mxu0 %v7974_v53  ;;  %7004 = vmatmul.mubr.f32.gmra.mxu1 %v8017_v19  ;;  %v3511_v53 = vld [vmem:[%s8620_s0] sm:$0xff] }
 0x26e   : >> { %7010 = vmatpush3.msra.mxu0 %v8001_v33  ;;  %6984 = vmatprep.mubr.f32.mxu0 %v7972_v2  ;;  %v8098_v2 = vand.u32 4294901760, %v3782_v47  ;;  %v8106_v13 = vand.u32 4294901760, %v3511_v53 }
 0x26f   : >> { %7006 = vmatprep.mubr.f32.mxu1 %v8020_v52  ;;  %7037 = vmatprep.subr.mxu0 %v8023_v41 }
 0x270   : >> { %v8119_v63 = vsub.f32 %v3782_v47, %v8098_v2  ;;  %v8129_v9 = vsub.f32 %v3511_v53, %v8106_v13  ;;  %v3271_v47 = vpop.trf.xlu0 }
 0x271   : >> { %6985 = vmatmul.mubr.f32.gmra.mxu0 %v7995_v40  ;;  %7007 = vmatmul.mubr.f32.gmra.mxu1 %v8032_v39  ;;  %v3862_v40 = vsub.f32 %v8072_v4, %v3861_v16 }
 0x272   : >> { %6987 = vmatprep.mubr.f32.mxu0 %v7997_v26  ;;  %7025 = vmatprep.mubr.f32.mxu1 %v8063_v14  ;;  %v8121_v26 = vand.u32 4294901760, %v3788_v27  ;;  %v8154_v51 = vand.u32 4294901760, %v8129_v9 }
 0x273   : >> { %v3863_v61 = vand.u32 4294901760, %v3862_v40 }
 0x274   : >> { %v4744_v49 = vsub.f32 %v8129_v9, %v8154_v51 }
 0x275   : >> { %6988 = vmatmul.mubr.f32.gmra.mxu0 %v8017_v19  ;;  %7026 = vmatmul.mubr.f32.vlgmr.msra.gmra.mxu1 %v8074_v62  ;;  %v3901_v19 = vand.u32 4294901760, %v8119_v63 }
 0x276   : >> { %6990 = vmatprep.mubr.f32.mxu0 %v8020_v52  ;;  %7028 = vmatprep.mubr.f32.mxu1 %v8076_v54  ;;  %v8141_v52 = vsub.f32 %v3788_v27, %v8121_v26  ;;  %v4745_v55 = vand.u32 4294901760, %v4744_v49 }
 0x277   : >> { %7052 = vmatpush3.msra.mxu1 %v8001_v33  ;;  %v3902_v15 = vsub.f32 %v8119_v63, %v3901_v19 }
 0x278   : >> { %7079 = vmatprep.subr.mxu1 %v8001_v33  ;;  %v3921_v59 = vand.u32 4294901760, %v8141_v52 }
 0x279   : >> { %6991 = vmatmul.mubr.f32.gmra.mxu0 %v8032_v39  ;;  %7029 = vmatmul.mubr.f32.gmra.mxu1 %v8089_v60  ;;  %v3931_v39 = vand.u32 4294901760, %v3930_v10  ;;  %v3903_v20 = vand.u32 4294901760, %v3902_v15 }
 0x27a   : >> { %7011 = vmatprep.mubr.f32.mxu0 %v3863_v61  ;;  %7031 = vmatprep.mubr.f32.mxu1 %v8098_v2  ;;  %v3922_v23 = vsub.f32 %v8141_v52, %v3921_v59 }
 0x27b   : >> { %v3932_v5 = vsub.f32 %v3930_v10, %v3931_v39 }
 0x27c   : >> { %v3923_v7 = vand.u32 4294901760, %v3922_v23 }
 0x27d   : >> { %7012 = vmatmul.mubr.f32.vlgmr.msra.gmra.mxu0 %v3873_v56  ;;  %7032 = vmatmul.mubr.f32.gmra.mxu1 %v8112_v58  ;;  %v3933_v3 = vand.u32 4294901760, %v3932_v5 }
 0x27e   : >> { %7038 = vmatpush3.msra.mxu0 %v8023_v41  ;;  %7014 = vmatprep.mubr.f32.mxu0 %v3883_v11  ;;  %v3913_v41 = vand.u32 4294901760, %v3912_v38 }
 0x27f   : >> { %7034 = vmatprep.mubr.f32.mxu1 %v8121_v26  ;;  %7065 = vmatprep.subr.mxu0 %v8038_v43 }
 0x281   : >> { %7015 = vmatmul.mubr.f32.gmra.mxu0 %v3893_v24  ;;  %7035 = vmatmul.mubr.f32.gmra.mxu1 %v8136_v37 }
 0x282   : >> { %7017 = vmatprep.mubr.f32.mxu0 %v3903_v20  ;;  %7053 = vmatprep.mubr.f32.mxu1 %v3861_v16 }
 0x285   : >> { %7018 = vmatmul.mubr.f32.gmra.mxu0 %v3913_v41  ;;  %7054 = vmatmul.mubr.f32.vlgmr.msra.gmra.mxu1 %v3871_v30 }
 0x286   : >> { %7020 = vmatprep.mubr.f32.mxu0 %v3923_v7  ;;  %7056 = vmatprep.mubr.f32.mxu1 %v3881_v45 }
 0x287   : >> { %7080 = vmatpush3.msra.mxu1 %v8001_v33  ;;  %v3335_v33 = vpop.trf.xlu0 }
 0x288   : >> { %7107 = vmatprep.subr.mxu1 %v4745_v55 }
 0x289   : >> { %7021 = vmatmul.mubr.f32.gmra.mxu0 %v3933_v3  ;;  %7057 = vmatmul.mubr.f32.gmra.mxu1 %v3891_v25 }
 0x28a   : >> { %7039 = vmatprep.mubr.f32.mxu0 %v8072_v4  ;;  %7059 = vmatprep.mubr.f32.mxu1 %v3901_v19  ;;  %v4541_v4 = vsel %vm770_vm0, %v3271_v47, 0 }
 0x28b   : >> { %v8181_v16 = vand.u32 4294901760, %v4541_v4  ;;  %v3399_v53 = vpop.trf.xlu0 }
 0x28c   : >> { %v4553_v40 = vsel %vm770_vm0, %v3399_v53, 0 }
 0x28d   : >> { %7040 = vmatmul.mubr.f32.vlgmr.msra.gmra.mxu0 %v8086_v29  ;;  %7060 = vmatmul.mubr.f32.gmra.mxu1 %v3911_v22  ;;  %v4544_v29 = vsel %vm770_vm0, %v3303_v34, 0  ;;  %v8190_v28 = vsub.f32 %v4541_v4, %v8181_v16  ;;  %v8213_v32 = vand.u32 4294901760, %v4553_v40 }
 0x28e   : >> { %7066 = vmatpush3.msra.mxu0 %v8038_v43  ;;  %7042 = vmatprep.mubr.f32.mxu0 %v8096_v0  ;;  %v3367_v43 = vpop.trf.xlu1  ;;  %v4547_v0 = vsel %vm770_vm0, %v3335_v33, 0  ;;  %v8192_v27 = vand.u32 4294901760, %v4544_v29 }
 0x28f   : >> { %7062 = vmatprep.mubr.f32.mxu1 %v3921_v59  ;;  %7093 = vmatprep.subr.mxu0 %v8106_v13  ;;  %v8194_v30 = vand.u32 4294901760, %v4547_v0  ;;  %v4632_v45 = vand.u32 4294901760, %v8190_v28  ;;  %v8230_v56 = vsub.f32 %v4553_v40, %v8213_v32 }
 0x291   : >> { %7043 = vmatmul.mubr.f32.gmra.mxu0 %v8110_v6  ;;  %7063 = vmatmul.mubr.f32.gmra.mxu1 %v3931_v39  ;;  %v4550_v6 = vsel %vm770_vm0, %v3367_v43, 0  ;;  %v4633_v48 = vsub.f32 %v8190_v28, %v4632_v45  ;;  %v4672_v15 = vand.u32 4294901760, %v8230_v56 }
 0x292   : >> { %7045 = vmatprep.mubr.f32.mxu0 %v8119_v63  ;;  %7081 = vmatprep.mubr.f32.mxu1 %v8063_v14  ;;  %v3431_v42 = vpop.trf.xlu1  ;;  %v8204_v63 = vsub.f32 %v4544_v29, %v8192_v27  ;;  %v8207_v36 = vand.u32 4294901760, %v4550_v6 }
 0x293   : >> { %v4556_v25 = vsel %vm770_vm0, %v3431_v42, 0  ;;  %v4634_v39 = vand.u32 4294901760, %v4633_v48  ;;  %v4673_v5 = vsub.f32 %v8230_v56, %v4672_v15 }
 0x294   : >> { %v4642_v19 = vand.u32 4294901760, %v8204_v63  ;;  %v8225_v61 = vand.u32 4294901760, %v4556_v25 }
 0x295   : >> { %7046 = vmatmul.mubr.f32.gmra.mxu0 %v8134_v46  ;;  %7082 = vmatmul.mubr.f32.vlgmr.msra.gmra.mxu1 %v8074_v62  ;;  %v4674_v3 = vand.u32 4294901760, %v4673_v5 }
 0x296   : >> { %7048 = vmatprep.mubr.f32.mxu0 %v8141_v52  ;;  %7084 = vmatprep.mubr.f32.mxu1 %v8076_v54  ;;  %v3495_v46 = vpop.trf.xlu1  ;;  %v8223_v52 = vsub.f32 %v4550_v6, %v8207_v36  ;;  %v4681_v59 = vsub.f32 %v4556_v25, %v8225_v61 }
 0x297   : >> { %7108 = vmatpush3.msra.mxu1 %v4745_v55 }
 0x298   : >> { %7135 = vmatprep.subr.mxu1 %v8106_v13  ;;  %v4662_v44 = vand.u32 4294901760, %v8223_v52  ;;  %v4682_v38 = vand.u32 4294901760, %v4681_v59 }
 0x299   : >> { %7049 = vmatmul.mubr.f32.gmra.mxu0 %v3930_v10  ;;  %7085 = vmatmul.mubr.f32.gmra.mxu1 %v8089_v60  ;;  %v4643_v10 = vsub.f32 %v8204_v63, %v4642_v19 }
 0x29a   : >> { %7067 = vmatprep.mubr.f32.mxu0 %v8063_v14  ;;  %7087 = vmatprep.mubr.f32.mxu1 %v8098_v2  ;;  %v3463_v14 = vpop.trf.xlu0  ;;  %v4663_v23 = vsub.f32 %v8223_v52, %v4662_v44  ;;  %v4683_v55 = vsub.f32 %v4681_v59, %v4682_v38 }
 0x29c   : >> { %v4664_v7 = vand.u32 4294901760, %v4663_v23  ;;  %v4684_v34 = vand.u32 4294901760, %v4683_v55 }
 0x29d   : >> { %7068 = vmatmul.mubr.f32.vlgmr.msra.gmra.mxu0 %v8074_v62  ;;  %7088 = vmatmul.mubr.f32.gmra.mxu1 %v8112_v58  ;;  %v8211_v62 = vsub.f32 %v4547_v0, %v8194_v30 }
 0x29e   : >> { %7094 = vmatpush3.msra.mxu0 %v8106_v13  ;;  %7070 = vmatprep.mubr.f32.mxu0 %v8076_v54  ;;  %v4559_v54 = vsel %vm770_vm0, %v3463_v14, 0 }
 0x29f   : >> { %7090 = vmatprep.mubr.f32.mxu1 %v8121_v26  ;;  %7121 = vmatprep.subr.mxu0 %v8129_v9  ;;  %v8232_v22 = vand.u32 4294901760, %v4559_v54 }
 0x2a1   : >> { %7071 = vmatmul.mubr.f32.gmra.mxu0 %v8089_v60  ;;  %7091 = vmatmul.mubr.f32.gmra.mxu1 %v8136_v37  ;;  %v4652_v60 = vand.u32 4294901760, %v8211_v62 }
 0x2a2   : >> { %7073 = vmatprep.mubr.f32.mxu0 %v8098_v2  ;;  %7109 = vmatprep.mubr.f32.mxu1 %v8181_v16  ;;  %v4562_v2 = vsel %vm770_vm0, %v3495_v46, 0 }
 0x2a3   : >> { %v8242_v11 = vand.u32 4294901760, %v4562_v2  ;;  %v4653_v24 = vsub.f32 %v8211_v62, %v4652_v60 }
 0x2a5   : >> { %7074 = vmatmul.mubr.f32.gmra.mxu0 %v8112_v58  ;;  %7110 = vmatmul.mubr.f32.vlgmr.msra.gmra.mxu1 %v8192_v27  ;;  %v4691_v58 = vsub.f32 %v4559_v54, %v8232_v22  ;;  %v4701_v20 = vsub.f32 %v4562_v2, %v8242_v11  ;;  %v4654_v41 = vand.u32 4294901760, %v4653_v24 }
 0x2a6   : >> { %7076 = vmatprep.mubr.f32.mxu0 %v8121_v26  ;;  %7112 = vmatprep.mubr.f32.mxu1 %v8194_v30  ;;  %v4644_v26 = vand.u32 4294901760, %v4643_v10 }
 0x2a7   : >> { %7136 = vmatpush3.msra.mxu1 %v8106_v13  ;;  %v4692_v49 = vand.u32 4294901760, %v4691_v58 }
 0x2a8   : >> { %7163 = vmatprep.subr.mxu1 %v8106_v13 }
 0x2a9   : >> { %7077 = vmatmul.mubr.f32.gmra.mxu0 %v8136_v37  ;;  %7113 = vmatmul.mubr.f32.gmra.mxu1 %v8207_v36  ;;  %v4702_v37 = vand.u32 4294901760, %v4701_v20  ;;  %v4693_v47 = vsub.f32 %v4691_v58, %v4692_v49 }
 0x2aa   : >> { %7095 = vmatprep.mubr.f32.mxu0 %v4634_v39  ;;  %7115 = vmatprep.mubr.f32.mxu1 %v8213_v32 }
 0x2ab   : >> { %v4703_v33 = vsub.f32 %v4701_v20, %v4702_v37  ;;  %v4694_v4 = vand.u32 4294901760, %v4693_v47 }
 0x2ad   : >> { %7096 = vmatmul.mubr.f32.vlgmr.msra.gmra.mxu0 %v4644_v26  ;;  %7116 = vmatmul.mubr.f32.gmra.mxu1 %v8225_v61 }
 0x2ae   : >> { %7122 = vmatpush3.msra.mxu0 %v8129_v9  ;;  %7098 = vmatprep.mubr.f32.mxu0 %v4654_v41  ;;  %v4704_v9 = vand.u32 4294901760, %v4703_v33 }
 0x2af   : >> { %7118 = vmatprep.mubr.f32.mxu1 %v8232_v22  ;;  %7149 = vmatprep.subr.mxu0 %v8154_v51 }
 0x2b1   : >> { %7099 = vmatmul.mubr.f32.gmra.mxu0 %v4664_v7  ;;  %7119 = vmatmul.mubr.f32.gmra.mxu1 %v8242_v11 }
 0x2b2   : >> { %7101 = vmatprep.mubr.f32.mxu0 %v4674_v3  ;;  %7137 = vmatprep.mubr.f32.mxu1 %v4632_v45 }
 0x2b5   : >> { %7102 = vmatmul.mubr.f32.gmra.mxu0 %v4684_v34  ;;  %7138 = vmatmul.mubr.f32.vlgmr.msra.gmra.mxu1 %v4642_v19 }
 0x2b6   : >> { %7104 = vmatprep.mubr.f32.mxu0 %v4694_v4  ;;  %7140 = vmatprep.mubr.f32.mxu1 %v4652_v60 }
 0x2b7   : >> { %7164 = vmatpush3.msra.mxu1 %v8106_v13 }
 0x2b8   : >> { %7193 = vmatprep.subr.mxu1 %v7925_v8 }
 0x2b9   : >> { %7105 = vmatmul.mubr.f32.gmra.mxu0 %v4704_v9  ;;  %7141 = vmatmul.mubr.f32.gmra.mxu1 %v4662_v44 }
 0x2ba   : >> { %7123 = vmatprep.mubr.f32.mxu0 %v8190_v28  ;;  %7143 = vmatprep.mubr.f32.mxu1 %v4672_v15 }
 0x2bd   : >> { %7124 = vmatmul.mubr.f32.vlgmr.msra.gmra.mxu0 %v8204_v63  ;;  %7144 = vmatmul.mubr.f32.gmra.mxu1 %v4682_v38 }
 0x2be   : >> { %7150 = vmatpush3.msra.mxu0 %v8154_v51  ;;  %7126 = vmatprep.mubr.f32.mxu0 %v8211_v62 }
 0x2bf   : >> { %7146 = vmatprep.mubr.f32.mxu1 %v4692_v49  ;;  %7177 = vmatprep.subr.mxu0 %v7779_v35 }
 0x2c1   : >> { %7127 = vmatmul.mubr.f32.gmra.mxu0 %v8223_v52  ;;  %7147 = vmatmul.mubr.f32.gmra.mxu1 %v4702_v37 }
 0x2c2   : >> { %7129 = vmatprep.mubr.f32.mxu0 %v8230_v56  ;;  %7165 = vmatprep.mubr.f32.mxu1 %v8181_v16 }
 0x2c5   : >> { %7130 = vmatmul.mubr.f32.gmra.mxu0 %v4681_v59  ;;  %7166 = vmatmul.mubr.f32.vlgmr.msra.gmra.mxu1 %v8192_v27 }
 0x2c6   : >> { %7132 = vmatprep.mubr.f32.mxu0 %v4691_v58  ;;  %7168 = vmatprep.mubr.f32.mxu1 %v8194_v30 }
 0x2c7   : >> { %7194 = vmatpush3.msra.mxu1 %v7925_v8 }
 0x2c8   : >> { %7195 = vmatprep.subr.mxu1 %v7932_v31 }
 0x2c9   : >> { %7133 = vmatmul.mubr.f32.gmra.mxu0 %v4701_v20  ;;  %7169 = vmatmul.mubr.f32.gmra.mxu1 %v8207_v36 }
 0x2ca   : >> { %7151 = vmatprep.mubr.f32.mxu0 %v8181_v16  ;;  %7171 = vmatprep.mubr.f32.mxu1 %v8213_v32 }
 0x2cb   : >> { %7196 = vmatpush3.msra.mxu1 %v7932_v31 }
 0x2cc   : >> { %7225 = vmatprep.subr.mxu1 %v7779_v35 }
 0x2cd   : >> { %7152 = vmatmul.mubr.f32.vlgmr.msra.gmra.mxu0 %v8192_v27  ;;  %7172 = vmatmul.mubr.f32.gmra.mxu1 %v8225_v61 }
 0x2ce   : >> { %7154 = vmatprep.mubr.f32.mxu0 %v8194_v30  ;;  %7174 = vmatprep.mubr.f32.mxu1 %v8232_v22 }
 0x2cf   : >> { %7178 = vmatpush3.msra.mxu0 %v7779_v35 }
 0x2d0   : >> { %7179 = vmatprep.subr.mxu0 %v7897_v18 }
 0x2d1   : >> { %7155 = vmatmul.mubr.f32.gmra.mxu0 %v8207_v36  ;;  %7175 = vmatmul.mubr.f32.gmra.mxu1 %v8242_v11 }
 0x2d2   : >> { %7157 = vmatprep.mubr.f32.mxu0 %v8213_v32  ;;  %7180 = vmatpush3.msra.mxu0 %v7897_v18 }
 0x2d3   : >> { %7209 = vmatprep.subr.mxu0 %v7894_v50 }
 0x2d5   : >> { %7158 = vmatmul.mubr.f32.gmra.mxu0 %v8225_v61 }
 0x2d6   : >> { %7160 = vmatprep.mubr.f32.mxu0 %v8232_v22 }
 0x2d9   : >> { %7161 = vmatmul.mubr.f32.gmra.mxu0 %v8242_v11 }
 0x305   : >> { %v6935_v8 = vpop.f32.mrf.mxu1 }
 0x307   : >> { %v2690_v31 = vpop.f32.mrf.mxu1 }
 0x309   : >> { %v6938_v13 = vpop.f32.mrf.mxu1 }
 0x30b   : >> { %v2702_v51 = vpop.f32.mrf.mxu1 }
 0x30d   : >> { %v6919_v43 = vpop.f32.mrf.mxu0  ;;  %v6941_v16 = vpop.f32.mrf.mxu1 }
 0x30e   : >> { %v2697_v22 = vadd.f32 %v6935_v8, %v6919_v43 }
 0x30f   : >> { %v2539_v29 = vpop.f32.mrf.mxu0  ;;  %v2714_v53 = vpop.f32.mrf.mxu1 }
 0x310   : >> { %v2691_v44 = vadd.f32 %v2690_v31, %v2539_v29 }
 0x311   : >> { %v6922_v0 = vpop.f32.mrf.mxu0  ;;  %v6944_v28 = vpop.f32.mrf.mxu1 }
 0x312   : >> { %v2709_v58 = vadd.f32 %v6938_v13, %v6922_v0 }
 0x313   : >> { %v2559_v27 = vpop.f32.mrf.mxu0  ;;  %v2726_v42 = vpop.f32.mrf.mxu1 }
 0x314   : >> { %v2703_v38 = vadd.f32 %v2702_v51, %v2559_v27 }
 0x315   : >> { %v6925_v30 = vpop.f32.mrf.mxu0  ;;  %v6967_v6 = vpop.f32.mrf.mxu1 }
 0x316   : >> { %v2721_v5 = vadd.f32 %v6941_v16, %v6925_v30 }
 0x317   : >> { %v2579_v40 = vpop.f32.mrf.mxu0  ;;  %v2932_v14 = vpop.f32.mrf.mxu1 }
 0x318   : >> { %v2715_v3 = vadd.f32 %v2714_v53, %v2579_v40 }
 0x319   : >> { %v6928_v45 = vpop.f32.mrf.mxu0  ;;  %v6970_v63 = vpop.f32.mrf.mxu1 }
 0x31a   : >> { %v2733_v31 = vadd.f32 %v6944_v28, %v6928_v45 }
 0x31b   : >> { %v2599_v36 = vpop.f32.mrf.mxu0  ;;  %v2948_v62 = vpop.f32.mrf.mxu1 }
 0x31c   : >> { %v2727_v0 = vadd.f32 %v2726_v42, %v2599_v36 }
 0x31d   : >> { %v6951_v32 = vpop.f32.mrf.mxu0  ;;  %v6973_v25 = vpop.f32.mrf.mxu1 }
 0x31e   : >> { %v2816_v59 = vadd.f32 %v6951_v32, %v2697_v22 }
 0x31f   : >> { %v2808_v54 = vpop.f32.mrf.mxu0  ;;  %v2964_v46 = vpop.f32.mrf.mxu1 }
 0x320   : >> { %v2809_v39 = vadd.f32 %v2808_v54, %v2691_v44  ;;  %v2941_v23 = vadd.f32 %v6967_v6, %v2816_v59 }
 0x321   : >> { %v6954_v19 = vpop.f32.mrf.mxu0  ;;  %v6976_v52 = vpop.f32.mrf.mxu1 }
 0x322   : >> { %v2830_v20 = vadd.f32 %v6954_v19, %v2709_v58  ;;  %v2933_v55 = vadd.f32 %v2932_v14, %v2809_v39 }
 0x323   : >> { %v2822_v61 = vpop.f32.mrf.mxu0  ;;  %v8293_v48 = vpop.f32.mrf.mxu1 }
 0x324   : >> { %v2823_v37 = vadd.f32 %v2822_v61, %v2703_v38  ;;  %v2957_v8 = vadd.f32 %v6970_v63, %v2830_v20 }
 0x325   : >> { %v6957_v60 = vpop.f32.mrf.mxu0  ;;  %v6999_v56 = vpop.f32.mrf.mxu1 }
 0x326   : >> { %v2844_v33 = vadd.f32 %v6957_v60, %v2721_v5  ;;  %v2949_v53 = vadd.f32 %v2948_v62, %v2823_v37 }
 0x327   : >> { %v2836_v2 = vpop.f32.mrf.mxu0  ;;  %v3180_v10 = vpop.f32.mrf.mxu1 }
 0x328   : >> { %v2837_v43 = vadd.f32 %v2836_v2, %v2715_v3  ;;  %v2973_v63 = vadd.f32 %v6973_v25, %v2844_v33 }
 0x329   : >> { %v6960_v11 = vpop.f32.mrf.mxu0  ;;  %v7002_v15 = vpop.f32.mrf.mxu1 }
 0x32a   : >> { %v2858_v6 = vadd.f32 %v6960_v11, %v2733_v31  ;;  %v2965_v62 = vadd.f32 %v2964_v46, %v2837_v43 }
 0x32b   : >> { %v2850_v24 = vpop.f32.mrf.mxu0  ;;  %v3192_v26 = vpop.f32.mrf.mxu1 }
 0x32c   : >> { %v2851_v32 = vadd.f32 %v2850_v24, %v2727_v0 }
 0x32d   : >> { %v6983_v49 = vpop.f32.mrf.mxu0  ;;  %v7005_v41 = vpop.f32.mrf.mxu1 }
 0x32e   : >> { %v3072_v7 = vadd.f32 %v6983_v49, %v2941_v23  ;;  %v2981_v44 = vadd.f32 %v8293_v48, %v2851_v32 }
 0x32f   : >> { %v3065_v47 = vpop.f32.mrf.mxu0  ;;  %v3204_v34 = vpop.f32.mrf.mxu1 }
 0x330   : >> { %v3187_v4 = vadd.f32 %v6999_v56, %v3072_v7  ;;  %v3066_v9 = vadd.f32 %v3065_v47, %v2933_v55  ;;  %v2989_v56 = vadd.f32 %v6976_v52, %v2858_v6 }
 0x331   : >> { %v6986_v13 = vpop.f32.mrf.mxu0  ;;  %v7008_v51 = vpop.f32.mrf.mxu1 }
 0x332   : >> { %3230 = vst.msk [vmem:[%s8298_s8 + $0x8] sm:$0xff] %vm2441_vm1, %v3187_v4  ;;  %v3181_v16 = vadd.f32 %v3180_v10, %v3066_v9  ;;  %v3084_v29 = vadd.f32 %v6986_v13, %v2957_v8 }
 0x333   : >> { %v3077_v27 = vpop.f32.mrf.mxu0  ;;  %v3216_v30 = vpop.f32.mrf.mxu1 }
 0x334   : >> { %3229 = vst.msk [vmem:[%s8298_s8] sm:$0xff] %vm2441_vm1, %v3181_v16  ;;  %v3199_v40 = vadd.f32 %v7002_v15, %v3084_v29  ;;  %v3078_v14 = vadd.f32 %v3077_v27, %v2949_v53 }
 0x335   : >> { %v6989_v28 = vpop.f32.mrf.mxu0  ;;  %v7027_v45 = vpop.f32.mrf.mxu1 }
 0x336   : >> { %3232 = vst.msk [vmem:[%s8298_s8 + $0x108] sm:$0xff] %vm2441_vm1, %v3199_v40  ;;  %v3193_v54 = vadd.f32 %v3192_v26, %v3078_v14  ;;  %v3096_v19 = vadd.f32 %v6989_v28, %v2973_v63 }
 0x337   : >> { %v3089_v42 = vpop.f32.mrf.mxu0  ;;  %v8306_v36 = vpop.f32.mrf.mxu1 }
 0x338   : >> { %3231 = vst.msk [vmem:[%s8298_s8 + $0x100] sm:$0xff] %vm2441_vm1, %v3193_v54  ;;  %v3211_v61 = vadd.f32 %v7005_v41, %v3096_v19  ;;  %v3090_v60 = vadd.f32 %v3089_v42, %v2965_v62 }
 0x339   : >> { %v6992_v25 = vpop.f32.mrf.mxu0  ;;  %v7030_v22 = vpop.f32.mrf.mxu1 }
 0x33a   : >> { %3234 = vst.msk [vmem:[%s8298_s8 + $0x208] sm:$0xff] %vm2441_vm1, %v3211_v61  ;;  %v3205_v2 = vadd.f32 %v3204_v34, %v3090_v60  ;;  %v3108_v10 = vadd.f32 %v6992_v25, %v2989_v56 }
 0x33b   : >> { %v3101_v59 = vpop.f32.mrf.mxu0  ;;  %v8313_v46 = vpop.f32.mrf.mxu1 }
 0x33c   : >> { %3233 = vst.msk [vmem:[%s8298_s8 + $0x200] sm:$0xff] %vm2441_vm1, %v3205_v2  ;;  %v3223_v11 = vadd.f32 %v7008_v51, %v3108_v10  ;;  %v3102_v15 = vadd.f32 %v3101_v59, %v2981_v44 }
 0x33d   : >> { %v7013_v58 = vpop.f32.mrf.mxu0  ;;  %v7033_v39 = vpop.f32.mrf.mxu1 }
 0x33e   : >> { %3236 = vst.msk [vmem:[%s8298_s8 + $0x308] sm:$0xff] %vm2441_vm1, %v3223_v11  ;;  %v3217_v52 = vadd.f32 %v3216_v30, %v3102_v15  ;;  %v8319_v24 = vadd.f32 %v7027_v45, %v7013_v58 }
 0x33f   : >> { %v3865_v26 = vpop.f32.mrf.mxu0  ;;  %v8321_v38 = vpop.f32.mrf.mxu1 }
 0x340   : >> { %3235 = vst.msk [vmem:[%s8298_s8 + $0x300] sm:$0xff] %vm2441_vm1, %v3217_v52  ;;  %v4012_v57 = vadd.f32 %v8306_v36, %v3865_v26 }
 0x341   : >> { %v7016_v48 = vpop.f32.mrf.mxu0  ;;  %v7036_v20 = vpop.f32.mrf.mxu1 }
 0x342   : >> { %v8325_v23 = vadd.f32 %v7030_v22, %v7016_v48 }
 0x343   : >> { %v3885_v49 = vpop.f32.mrf.mxu0  ;;  %v8327_v41 = vpop.f32.mrf.mxu1 }
 0x345   : >> { %v7019_v5 = vpop.f32.mrf.mxu0  ;;  %v8329_v37 = vpop.f32.mrf.mxu1 }
 0x346   : >> { %v8331_v7 = vadd.f32 %v7033_v39, %v7019_v5 }
 0x347   : >> { %v3905_v55 = vpop.f32.mrf.mxu0  ;;  %v4250_v3 = vpop.f32.mrf.mxu1 }
 0x348   : >> { %v4036_v36 = vadd.f32 %v8321_v38, %v3905_v55 }
 0x349   : >> { %v7022_v47 = vpop.f32.mrf.mxu0  ;;  %v8333_v34 = vpop.f32.mrf.mxu1 }
 0x34a   : >> { %v8335_v33 = vadd.f32 %v7036_v20, %v7022_v47 }
 0x34b   : >> { %v8337_v4 = vpop.f32.mrf.mxu0  ;;  %v8339_v9 = vpop.f32.mrf.mxu1 }
 0x34d   : >> { %v7041_v8 = vpop.f32.mrf.mxu0  ;;  %v8341_v31 = vpop.f32.mrf.mxu1 }
 0x34f   : >> { %v4127_v13 = vpop.f32.mrf.mxu0  ;;  %v8343_v51 = vpop.f32.mrf.mxu1 }
 0x350   : >> { %v4128_v50 = vadd.f32 %v4127_v13, %v4012_v57 }
 0x351   : >> { %v7044_v43 = vpop.f32.mrf.mxu0  ;;  %v8345_v16 = vpop.f32.mrf.mxu1 }
 0x352   : >> { %v4149_v57 = vadd.f32 %v7044_v43, %v8325_v23 }
 0x353   : >> { %v4141_v29 = vpop.f32.mrf.mxu0  ;;  %v8347_v53 = vpop.f32.mrf.mxu1 }
 0x354   : >> { %v4275_v23 = vadd.f32 %v8333_v34, %v4149_v57 }
 0x355   : >> { %v7047_v0 = vpop.f32.mrf.mxu0  ;;  %v8349_v27 = vpop.f32.mrf.mxu1 }
 0x356   : >> { %v4163_v55 = vadd.f32 %v7047_v0, %v8331_v7 }
 0x357   : >> { %v4155_v30 = vpop.f32.mrf.mxu0  ;;  %v4494_v6 = vpop.f32.mrf.mxu1 }
 0x358   : >> { %v4291_v34 = vadd.f32 %v8341_v31, %v4163_v55 }
 0x359   : >> { %v8351_v40 = vpop.f32.mrf.mxu0  ;;  %v8353_v14 = vpop.f32.mrf.mxu1 }
 0x35b   : >> { %v4169_v63 = vpop.f32.mrf.mxu0  ;;  %v8355_v28 = vpop.f32.mrf.mxu1 }
 0x35d   : >> { %v7069_v45 = vpop.f32.mrf.mxu0  ;;  %v8357_v32 = vpop.f32.mrf.mxu1 }
 0x35f   : >> { %v4380_v54 = vpop.f32.mrf.mxu0  ;;  %v8359_v19 = vpop.f32.mrf.mxu1 }
 0x361   : >> { %v7072_v62 = vpop.f32.mrf.mxu0  ;;  %v8361_v42 = vpop.f32.mrf.mxu1 }
 0x362   : >> { %8670 = vst [vmem:[#allocation8_spill] sm:$0xff] %v8361_v42 }
 0x363   : >> { %v4392_v61 = vpop.f32.mrf.mxu0  ;;  %v8363_v60 = vpop.f32.mrf.mxu1 }
 0x365   : >> { %v8365_v56 = vpop.f32.mrf.mxu0  ;;  %v8367_v25 = vpop.f32.mrf.mxu1 }
 0x367   : >> { %v4404_v22 = vpop.f32.mrf.mxu0  ;;  %v8369_v2 = vpop.f32.mrf.mxu1 }
 0x369   : >> { %v8371_v10 = vpop.f32.mrf.mxu0  ;;  %v8373_v44 = vpop.f32.mrf.mxu1 }
 0x36a   : >> { %8671 = vst [vmem:[#allocation12_spill] sm:$0xff] %v8373_v44 }
 0x36b   : >> { %v8375_v59 = vpop.f32.mrf.mxu0  ;;  %v8377_v11 = vpop.f32.mrf.mxu1 }
 0x36d   : >> { %v7097_v15 = vpop.f32.mrf.mxu0  ;;  %v8379_v58 = vpop.f32.mrf.mxu1 }
 0x36e   : >> { %8672 = vst [vmem:[#allocation15_spill] sm:$0xff] %v8379_v58  ;;  %v4024_v58 = vadd.f32 %v8313_v46, %v3885_v49 }
 0x36f   : >> { %v4636_v39 = vpop.f32.mrf.mxu0  ;;  %v8381_v52 = vpop.f32.mrf.mxu1 }
 0x370   : >> { %8673 = vst [vmem:[#allocation11_spill] sm:$0xff] %v8381_v52  ;;  %v4142_v42 = vadd.f32 %v4141_v29, %v4024_v58 }
 0x371   : >> { %v7100_v48 = vpop.f32.mrf.mxu0  ;;  %v8383_v20 = vpop.f32.mrf.mxu1 }
 0x372   : >> { %8674 = vst [vmem:[#allocation14_spill] sm:$0xff] %v8383_v20  ;;  %v4135_v20 = vadd.f32 %v7041_v8, %v8319_v24  ;;  %v4267_v8 = vadd.f32 %v8339_v9, %v4142_v42 }
 0x373   : >> { %v4656_v5 = vpop.f32.mrf.mxu0  ;;  %v8385_v47 = vpop.f32.mrf.mxu1 }
 0x374   : >> { %8675 = vst [vmem:[#allocation17_spill] sm:$0xff] %v8385_v47  ;;  %v4259_v13 = vadd.f32 %v8329_v37, %v4135_v20  ;;  %v4393_v43 = vadd.f32 %v4392_v61, %v4267_v8 }
 0x375   : >> { %v8387_v1 = vpop.f32.mrf.mxu0  ;;  %v8389_v12 = vpop.f32.mrf.mxu1 }
 0x376   : >> { %8676 = vst [vmem:[#allocation13_spill] sm:$0xff] %v8389_v12  ;;  %v4251_v12 = vadd.f32 %v4250_v3, %v4128_v50  ;;  %v4387_v24 = vadd.f32 %v7069_v45, %v4259_v13  ;;  %v4048_v50 = vadd.f32 %v8327_v41, %v8337_v4  ;;  %v4399_v45 = vadd.f32 %v7072_v62, %v4275_v23  ;;  %v8679_v13 = vld [vmem:[#allocation12_spill] sm:$0xff] }
 0x377   : >> { %v4676_v17 = vpop.f32.mrf.mxu0  ;;  %v8392_v21 = vpop.f32.mrf.mxu1  ;;  %v4177_v41 = vadd.f32 %v8351_v40, %v8335_v33 }
 0x378   : >> { %v4501_v9 = vadd.f32 %v8349_v27, %v4387_v24  ;;  %v4513_v27 = vadd.f32 %v8353_v14, %v4399_v45 }
 0x379   : >> { %v8394_v18 = vpop.f32.mrf.mxu0  ;;  %v8396_v35 = vpop.f32.mrf.mxu1  ;;  %v4307_v33 = vadd.f32 %v8345_v16, %v4177_v41 }
 0x37a   : >> { %8677 = vst [vmem:[#allocation20_spill] sm:$0xff] %v8394_v18  ;;  %8678 = vst [vmem:[#allocation21_spill] sm:$0xff] %v8396_v35  ;;  %v4381_v35 = vadd.f32 %v4380_v54, %v4251_v12  ;;  %v4156_v18 = vadd.f32 %v4155_v30, %v4036_v36  ;;  %v4170_v12 = vadd.f32 %v4169_v63, %v4048_v50 }
 0x37b   : >> { %v8400_v52 = vpop.f32.mrf.mxu0  ;;  %v8402_v47 = vpop.f32.mrf.mxu1  ;;  %v4647_v0 = vadd.f32 %v7097_v15, %v4501_v9  ;;  %v4411_v63 = vadd.f32 %v8365_v56, %v4291_v34  ;;  %v4423_v20 = vadd.f32 %v8371_v10, %v4307_v33 }
 0x37c   : >> { %v4495_v37 = vadd.f32 %v4494_v6, %v4381_v35  ;;  %v4283_v29 = vadd.f32 %v8343_v51, %v4156_v18  ;;  %v4507_v35 = vadd.f32 %v8355_v28, %v4393_v43  ;;  %v4299_v18 = vadd.f32 %v8347_v53, %v4170_v12 }
 0x37d   : >> { %v7125_v26 = vpop.f32.mrf.mxu0  ;;  %v8405_v44 = vpop.f32.mrf.mxu1  ;;  %v4667_v28 = vadd.f32 %v7100_v48, %v4513_v27  ;;  %v4789_v53 = vadd.f32 %v8367_v25, %v4647_v0  ;;  %v4525_v14 = vadd.f32 %v8357_v32, %v4411_v63 }
 0x37e   : >> { %v4637_v42 = vadd.f32 %v4636_v39, %v4495_v37  ;;  %v4405_v4 = vadd.f32 %v4404_v22, %v4283_v29  ;;  %v4657_v62 = vadd.f32 %v4656_v5, %v4507_v35  ;;  %v4417_v40 = vadd.f32 %v8375_v59, %v4299_v18  ;;  %v8684_v29 = vld [vmem:[#allocation15_spill] sm:$0xff]  ;;  %v8687_v35 = vld [vmem:[#allocation14_spill] sm:$0xff] }
 0x37f   : >> { %v4898_v46 = vpop.f32.mrf.mxu0  ;;  %v8409_v49 = vpop.f32.mrf.mxu1  ;;  %v4906_v5 = vadd.f32 %v7125_v26, %v4789_v53  ;;  %v4801_v48 = vadd.f32 %v8679_v13, %v4667_v28 }
 0x380   : >> { %v4783_v61 = vadd.f32 %v8369_v2, %v4637_v42  ;;  %v4519_v31 = vadd.f32 %v8359_v19, %v4405_v4  ;;  %v4795_v2 = vadd.f32 %v8377_v11, %v4657_v62  ;;  %v4531_v16 = vadd.f32 %v8363_v60, %v4417_v40  ;;  %v8682_v11 = vld [vmem:[#allocation13_spill] sm:$0xff] }
 0x381   : >> { %v7128_v3 = vpop.f32.mrf.mxu0  ;;  %v8414_v38 = vpop.f32.mrf.mxu1  ;;  %v4687_v19 = vadd.f32 %v8387_v1, %v4525_v14  ;;  %v5030_v55 = vadd.f32 %v8682_v11, %v4906_v5  ;;  %v8683_v23 = vld [vmem:[#allocation20_spill] sm:$0xff]  ;;  %v8685_v4 = vld [vmem:[#allocation17_spill] sm:$0xff] }
 0x382   : >> { %v4899_v39 = vadd.f32 %v4898_v46, %v4783_v61  ;;  %v4677_v56 = vadd.f32 %v4676_v17, %v4519_v31  ;;  %v8680_v46 = vld [vmem:[#allocation8_spill] sm:$0xff]  ;;  %v8681_v17 = vld [vmem:[#allocation11_spill] sm:$0xff]  ;;  %v4697_v32 = vadd.f32 %v8400_v52, %v4531_v16  ;;  %v4920_v26 = vadd.f32 %v7128_v3, %v4801_v48  ;;  %v8686_v52 = vld [vmem:[#allocation21_spill] sm:$0xff] }
 0x383   : >> { %v4912_v30 = vpop.f32.mrf.mxu0  ;;  %v8419_v54 = vpop.f32.mrf.mxu1  ;;  %v4537_v10 = vadd.f32 %v8680_v46, %v4423_v20 }
 0x384   : >> { %v4913_v24 = vadd.f32 %v4912_v30, %v4795_v2  ;;  %v5022_v25 = vadd.f32 %v8392_v21, %v4899_v39  ;;  %v4807_v8 = vadd.f32 %v8681_v17, %v4677_v56  ;;  %v4813_v30 = vadd.f32 %v8684_v29, %v4687_v19 }
 0x385   : >> { %v7131_v58 = vpop.f32.mrf.mxu0  ;;  %v7167_v7 = vpop.f32.mrf.mxu1  ;;  %v4707_v43 = vadd.f32 %v8683_v23, %v4537_v10  ;;  %v4819_v34 = vadd.f32 %v8685_v4, %v4697_v32  ;;  %v5046_v3 = vadd.f32 %v8686_v52, %v4920_v26 }
 0x386   : >> { %v5038_v21 = vadd.f32 %v8402_v47, %v4913_v24  ;;  %v4934_v41 = vadd.f32 %v7131_v58, %v4813_v30 }
 0x387   : >> { %v4926_v51 = vpop.f32.mrf.mxu0  ;;  %v5265_v6 = vpop.f32.mrf.mxu1  ;;  %v4825_v18 = vadd.f32 %v8687_v35, %v4707_v43 }
 0x388   : >> { %v4927_v37 = vadd.f32 %v4926_v51, %v4807_v8  ;;  %v5062_v58 = vadd.f32 %v8405_v44, %v4934_v41 }
 0x389   : >> { %v7134_v22 = vpop.f32.mrf.mxu0  ;;  %v7170_v15 = vpop.f32.mrf.mxu1 }
 0x38a   : >> { %v5054_v27 = vadd.f32 %v8409_v49, %v4927_v37 }
 0x38b   : >> { %v4940_v36 = vpop.f32.mrf.mxu0  ;;  %v5277_v59 = vpop.f32.mrf.mxu1 }
 0x38c   : >> { %v4941_v62 = vadd.f32 %v4940_v36, %v4819_v34 }
 0x38d   : >> { %v7153_v57 = vpop.f32.mrf.mxu0  ;;  %v7173_v1 = vpop.f32.mrf.mxu1 }
 0x38e   : >> { %v5158_v45 = vadd.f32 %v7153_v57, %v5030_v55  ;;  %v5070_v56 = vadd.f32 %v8419_v54, %v4941_v62  ;;  %v8688_v55 = vld [vmem:[#allocation7_spill] sm:$0xff] }
 0x38f   : >> { %v5151_v50 = vpop.f32.mrf.mxu0  ;;  %v5289_v63 = vpop.f32.mrf.mxu1 }
 0x390   : >> { %v5152_v60 = vadd.f32 %v5151_v50, %v5022_v25  ;;  %v5272_v61 = vadd.f32 %v7167_v7, %v5158_v45 }
 0x391   : >> { %v7156_v12 = vpop.f32.mrf.mxu0  ;;  %v7176_v28 = vpop.f32.mrf.mxu1 }
 0x392   : >> { %v5266_v9 = vadd.f32 %v5265_v6, %v5152_v60  ;;  %v5170_v33 = vadd.f32 %v7156_v12, %v5046_v3  ;;  %v4948_v6 = vadd.f32 %v7134_v22, %v4825_v18 }
 0x393   : >> { %v5163_v42 = vpop.f32.mrf.mxu0  ;;  %v5301_v36 = vpop.f32.mrf.mxu1 }
 0x394   : >> { %v5164_v0 = vadd.f32 %v5163_v42, %v5038_v21  ;;  %5311 = vxpose.xlu0.b32.start [1/2] (short) (narrow) %v5266_v9, 16  ;;  %v5284_v39 = vadd.f32 %v7170_v15, %v5170_v33  ;;  %v5078_v49 = vadd.f32 %v8414_v38, %v4948_v6  ;;  %v8690_v33 = vld [vmem:[#allocation18_spill] sm:$0xff] }
 0x395   : >> { %v7159_v51 = vpop.f32.mrf.mxu0 }
 0x396   : >> { %v5278_v40 = vadd.f32 %v5277_v59, %v5164_v0  ;;  %v5182_v20 = vadd.f32 %v7159_v51, %v5062_v58 }
 0x397   : >> { %v5175_v47 = vpop.f32.mrf.mxu0 }
 0x398   : >> { %v5176_v31 = vadd.f32 %v5175_v47, %v5054_v27  ;;  %5343 = vxpose.xlu1.b32.start [1/2] (short) (narrow) %v5278_v40, 16  ;;  %5312 = vxpose.xlu0.b32.end [2/2] (short) (narrow) %v5272_v61, 16  ;;  %v5296_v22 = vadd.f32 %v7173_v1, %v5182_v20  ;;  %v8689_v1 = vld [vmem:[#allocation19_spill] sm:$0xff] }
 0x399   : >> { %v7162_v53 = vpop.f32.mrf.mxu0 }
 0x39a   : >> { %v5290_v14 = vadd.f32 %v5289_v63, %v5176_v31  ;;  %v5194_v2 = vadd.f32 %v7162_v53, %v5078_v49  ;;  %v8692_v49 = vld [vmem:[#allocation16_spill] sm:$0xff] }
 0x39b   : >> { %v5187_v5 = vpop.f32.mrf.mxu0 }
 0x39c   : >> { %v5188_v7 = vadd.f32 %v5187_v5, %v5070_v56  ;;  %5344 = vxpose.xlu1.b32.end [2/2] (short) (narrow) %v5284_v39, 16  ;;  %5375 = vxpose.xlu0.b32.start [1/2] (short) (narrow) %v5290_v14, 16  ;;  %v5308_v16 = vadd.f32 %v7176_v28, %v5194_v2  ;;  %v8691_v28 = vld [vmem:[#allocation9_spill] sm:$0xff]  ;;  %v8693_v2 = vld [vmem:[#allocation10_spill] sm:$0xff] }
 0x39e   : >> { %v5302_v44 = vadd.f32 %v5301_v36, %v5188_v7 }
 0x3a0   : >> { %5376 = vxpose.xlu0.b32.end [2/2] (short) (narrow) %v5296_v22, 16  ;;  %5407 = vxpose.xlu1.b32.start [1/2] (short) (narrow) %v5302_v44, 16 }
 0x3a4   : >> { %5408 = vxpose.xlu1.b32.end [2/2] (short) (narrow) %v5308_v16, 16 }
 0x410   : >> { %v5327_v59 = vpop.trf.xlu0 }
 0x411   : >> { %v5440_v15 = vsel %vm2441_vm1, %v5327_v59, 0 }
 0x412   : >> { %v8456_v57 = vand.u32 4294901760, %v5440_v15 }
 0x414   : >> { %v8459_v54 = vsub.f32 %v5440_v15, %v8456_v57  ;;  %v5359_v38 = vpop.trf.xlu1  ;;  %7197 = vmatprep.mubr.f32.mxu1 %v8456_v57  ;;  %v5328_v19 = vpop.trf.xlu0 }
 0x415   : >> { %v5446_v13 = vsel %vm2441_vm1, %v5359_v38, 0  ;;  %v5443_v48 = vsel %vm2441_vm1, %v5328_v19, 0 }
 0x416   : >> { %v5532_v24 = vand.u32 4294901760, %v8459_v54  ;;  %v8465_v25 = vand.u32 4294901760, %v5446_v13  ;;  %v8467_v46 = vand.u32 4294901760, %v5443_v48 }
 0x418   : >> { %v8470_v10 = vsub.f32 %v5446_v13, %v8465_v25  ;;  %v8473_v17 = vsub.f32 %v5443_v48, %v8467_v46  ;;  %v5360_v8 = vpop.trf.xlu1  ;;  %7198 = vmatmul.mubr.f32.vlgmr.msra.gmra.mxu1 %v8467_v46  ;;  %v5391_v50 = vpop.trf.xlu0  ;;  %v5533_v32 = vsub.f32 %v8459_v54, %v5532_v24 }
 0x419   : >> { %v5449_v26 = vsel %vm2441_vm1, %v5360_v8, 0  ;;  %v5452_v11 = vsel %vm2441_vm1, %v5391_v50, 0  ;;  %7200 = vmatprep.mubr.f32.mxu1 %v8465_v25  ;;  %7226 = vmatpush3.msra.mxu1 %v8688_v55 }
 0x41a   : >> { %v5552_v60 = vand.u32 4294901760, %v8470_v10  ;;  %v5542_v23 = vand.u32 4294901760, %v8473_v17  ;;  %v8483_v43 = vand.u32 4294901760, %v5449_v26  ;;  %v8485_v37 = vand.u32 4294901760, %v5452_v11  ;;  %7227 = vmatprep.subr.mxu1 %v8689_v1 }
 0x41b   : >> { %v5534_v12 = vand.u32 4294901760, %v5533_v32  ;;  %7228 = vmatpush3.msra.mxu1 %v8689_v1 }
 0x41c   : >> { %v5543_v29 = vsub.f32 %v8473_v17, %v5542_v23  ;;  %v8491_v30 = vsub.f32 %v5449_v26, %v8483_v43  ;;  %v8494_v45 = vsub.f32 %v5452_v11, %v8485_v37  ;;  %7201 = vmatmul.mubr.f32.gmra.mxu1 %v8483_v43  ;;  %v5392_v21 = vpop.trf.xlu0  ;;  %v5423_v9 = vpop.trf.xlu1  ;;  %v5553_v42 = vsub.f32 %v8470_v10, %v5552_v60 }
 0x41d   : >> { %7181 = vmatprep.mubr.f32.mxu0 %v5534_v12  ;;  %v5455_v41 = vsel %vm2441_vm1, %v5392_v21, 0  ;;  %v5458_v4 = vsel %vm2441_vm1, %v5423_v9, 0  ;;  %7203 = vmatprep.mubr.f32.mxu1 %v8485_v37 }
 0x41e   : >> { %v5544_v34 = vand.u32 4294901760, %v5543_v29  ;;  %v5562_v52 = vand.u32 4294901760, %v8491_v30  ;;  %v5572_v3 = vand.u32 4294901760, %v8494_v45  ;;  %v8503_v0 = vand.u32 4294901760, %v5455_v41  ;;  %7257 = vmatprep.subr.mxu1 %v8688_v55 }
 0x41f   : >> { %v8506_v35 = vand.u32 4294901760, %v5458_v4  ;;  %v5554_v18 = vand.u32 4294901760, %v5553_v42 }
 0x420   : >> { %v5563_v63 = vsub.f32 %v8491_v30, %v5562_v52  ;;  %v5581_v51 = vsub.f32 %v5455_v41, %v8503_v0  ;;  %7182 = vmatmul.mubr.f32.vlgmr.msra.gmra.mxu0 %v5544_v34  ;;  %7204 = vmatmul.mubr.f32.gmra.mxu1 %v8503_v0  ;;  %v5424_v27 = vpop.trf.xlu1  ;;  %v5573_v62 = vsub.f32 %v8494_v45, %v5572_v3 }
 0x421   : >> { %v5591_v61 = vsub.f32 %v5458_v4, %v8506_v35  ;;  %7210 = vmatpush3.msra.mxu0 %v8690_v33  ;;  %v5461_v40 = vsel %vm2441_vm1, %v5424_v27, 0  ;;  %7184 = vmatprep.mubr.f32.mxu0 %v5554_v18 }
 0x422   : >> { %v5564_v47 = vand.u32 4294901760, %v5563_v63  ;;  %v5582_v6 = vand.u32 4294901760, %v5581_v51  ;;  %v5600_v58 = vand.u32 4294901760, %v5461_v40  ;;  %7206 = vmatprep.mubr.f32.mxu1 %v8506_v35  ;;  %v5574_v31 = vand.u32 4294901760, %v5573_v62  ;;  %7211 = vmatprep.subr.mxu0 %v8691_v28 }
 0x423   : >> { %v5592_v53 = vand.u32 4294901760, %v5591_v61  ;;  %7212 = vmatpush3.msra.mxu0 %v8691_v28 }
 0x424   : >> { %v5583_v39 = vsub.f32 %v5581_v51, %v5582_v6  ;;  %v5601_v20 = vsub.f32 %v5461_v40, %v5600_v58  ;;  %7185 = vmatmul.mubr.f32.gmra.mxu0 %v5564_v47  ;;  %7207 = vmatmul.mubr.f32.gmra.mxu1 %v5600_v58 }
 0x425   : >> { %7187 = vmatprep.mubr.f32.mxu0 %v5574_v31  ;;  %7229 = vmatprep.mubr.f32.mxu1 %v5532_v24  ;;  %v5593_v56 = vsub.f32 %v5591_v61, %v5592_v53 }
 0x426   : >> { %v5584_v14 = vand.u32 4294901760, %v5583_v39  ;;  %v5602_v5 = vand.u32 4294901760, %v5601_v20  ;;  %7241 = vmatprep.subr.mxu0 %v8692_v49 }
 0x427   : >> { %v5594_v7 = vand.u32 4294901760, %v5593_v56 }
 0x428   : >> { %v5603_v36 = vsub.f32 %v5601_v20, %v5602_v5  ;;  %7188 = vmatmul.mubr.f32.gmra.mxu0 %v5584_v14  ;;  %7230 = vmatmul.mubr.f32.vlgmr.msra.gmra.mxu1 %v5542_v23 }
 0x429   : >> { %7190 = vmatprep.mubr.f32.mxu0 %v5594_v7  ;;  %7232 = vmatprep.mubr.f32.mxu1 %v5552_v60 }
 0x42a   : >> { %v5604_v22 = vand.u32 4294901760, %v5603_v36  ;;  %7258 = vmatpush3.msra.mxu1 %v8688_v55 }
 0x42b   : >> { %7259 = vmatprep.subr.mxu1 %v8689_v1 }
 0x42c   : >> { %7191 = vmatmul.mubr.f32.gmra.mxu0 %v5604_v22  ;;  %7233 = vmatmul.mubr.f32.gmra.mxu1 %v5562_v52 }
 0x42d   : >> { %7213 = vmatprep.mubr.f32.mxu0 %v8459_v54  ;;  %7235 = vmatprep.mubr.f32.mxu1 %v5572_v3 }
 0x42e   : >> { %7260 = vmatpush3.msra.mxu1 %v8689_v1 }
 0x430   : >> { %7214 = vmatmul.mubr.f32.vlgmr.msra.gmra.mxu0 %v8473_v17  ;;  %7236 = vmatmul.mubr.f32.gmra.mxu1 %v5582_v6 }
 0x431   : >> { %7242 = vmatpush3.msra.mxu0 %v8692_v49  ;;  %7216 = vmatprep.mubr.f32.mxu0 %v8470_v10 }
 0x432   : >> { %7238 = vmatprep.mubr.f32.mxu1 %v5592_v53  ;;  %7243 = vmatprep.subr.mxu0 %v8693_v2 }
 0x433   : >> { %7244 = vmatpush3.msra.mxu0 %v8693_v2 }
 0x434   : >> { %7217 = vmatmul.mubr.f32.gmra.mxu0 %v8491_v30  ;;  %7239 = vmatmul.mubr.f32.gmra.mxu1 %v5602_v5 }
 0x435   : >> { %7219 = vmatprep.mubr.f32.mxu0 %v8494_v45  ;;  %7261 = vmatprep.mubr.f32.mxu1 %v8456_v57 }
 0x438   : >> { %7220 = vmatmul.mubr.f32.gmra.mxu0 %v5581_v51  ;;  %7262 = vmatmul.mubr.f32.vlgmr.msra.gmra.mxu1 %v8467_v46 }
 0x439   : >> { %7222 = vmatprep.mubr.f32.mxu0 %v5591_v61  ;;  %7264 = vmatprep.mubr.f32.mxu1 %v8465_v25 }
 0x43c   : >> { %7223 = vmatmul.mubr.f32.gmra.mxu0 %v5601_v20  ;;  %7265 = vmatmul.mubr.f32.gmra.mxu1 %v8483_v43 }
 0x43d   : >> { %7245 = vmatprep.mubr.f32.mxu0 %v8456_v57  ;;  %7267 = vmatprep.mubr.f32.mxu1 %v8485_v37 }
 0x440   : >> { %7246 = vmatmul.mubr.f32.vlgmr.msra.gmra.mxu0 %v8467_v46  ;;  %7268 = vmatmul.mubr.f32.gmra.mxu1 %v8503_v0 }
 0x441   : >> { %7248 = vmatprep.mubr.f32.mxu0 %v8465_v25  ;;  %7270 = vmatprep.mubr.f32.mxu1 %v8506_v35 }
 0x444   : >> { %7249 = vmatmul.mubr.f32.gmra.mxu0 %v8483_v43  ;;  %7271 = vmatmul.mubr.f32.gmra.mxu1 %v5600_v58 }
 0x445   : >> { %7251 = vmatprep.mubr.f32.mxu0 %v8485_v37 }
 0x448   : >> { %7252 = vmatmul.mubr.f32.gmra.mxu0 %v8503_v0 }
 0x449   : >> { %7254 = vmatprep.mubr.f32.mxu0 %v8506_v35 }
 0x44c   : >> { %7255 = vmatmul.mubr.f32.gmra.mxu0 %v5600_v58 }
 0x4d8   : >> { %v7199_v44 = vpop.f32.mrf.mxu1 }
 0x4da   : >> { %v5687_v16 = vpop.f32.mrf.mxu1 }
 0x4dc   : >> { %v7202_v59 = vpop.f32.mrf.mxu1 }
 0x4de   : >> { %v5699_v15 = vpop.f32.mrf.mxu1 }
 0x4e0   : >> { %v7183_v57 = vpop.f32.mrf.mxu0  ;;  %v7205_v54 = vpop.f32.mrf.mxu1 }
 0x4e1   : >> { %v5694_v21 = vadd.f32 %v7199_v44, %v7183_v57 }
 0x4e2   : >> { %v5536_v38 = vpop.f32.mrf.mxu0  ;;  %v5711_v19 = vpop.f32.mrf.mxu1 }
 0x4e3   : >> { %v5688_v41 = vadd.f32 %v5687_v16, %v5536_v38 }
 0x4e4   : >> { %v7186_v13 = vpop.f32.mrf.mxu0  ;;  %v7208_v48 = vpop.f32.mrf.mxu1 }
 0x4e5   : >> { %v5706_v3 = vadd.f32 %v7202_v59, %v7186_v13 }
 0x4e6   : >> { %v5556_v24 = vpop.f32.mrf.mxu0  ;;  %v5723_v25 = vpop.f32.mrf.mxu1 }
 0x4e7   : >> { %v5700_v18 = vadd.f32 %v5699_v15, %v5556_v24 }
 0x4e8   : >> { %v7189_v46 = vpop.f32.mrf.mxu0  ;;  %v7231_v10 = vpop.f32.mrf.mxu1 }
 0x4e9   : >> { %v5718_v61 = vadd.f32 %v7205_v54, %v7189_v46 }
 0x4ea   : >> { %v5576_v17 = vpop.f32.mrf.mxu0  ;;  %v5929_v8 = vpop.f32.mrf.mxu1 }
 0x4eb   : >> { %v5712_v6 = vadd.f32 %v5711_v19, %v5576_v17 }
 0x4ec   : >> { %v7192_v50 = vpop.f32.mrf.mxu0  ;;  %v7234_v32 = vpop.f32.mrf.mxu1 }
 0x4ed   : >> { %v5730_v20 = vadd.f32 %v7208_v48, %v7192_v50 }
 0x4ee   : >> { %v5596_v26 = vpop.f32.mrf.mxu0  ;;  %v5945_v11 = vpop.f32.mrf.mxu1 }
 0x4ef   : >> { %v5724_v22 = vadd.f32 %v5723_v25, %v5596_v26 }
 0x4f0   : >> { %v7215_v55 = vpop.f32.mrf.mxu0  ;;  %v7237_v60 = vpop.f32.mrf.mxu1 }
 0x4f1   : >> { %v5813_v4 = vadd.f32 %v7215_v55, %v5694_v21 }
 0x4f2   : >> { %v5805_v23 = vpop.f32.mrf.mxu0  ;;  %v5961_v43 = vpop.f32.mrf.mxu1 }
 0x4f3   : >> { %v5806_v0 = vadd.f32 %v5805_v23, %v5688_v41  ;;  %v5938_v51 = vadd.f32 %v7231_v10, %v5813_v4 }
 0x4f4   : >> { %v7218_v37 = vpop.f32.mrf.mxu0  ;;  %v7240_v1 = vpop.f32.mrf.mxu1 }
 0x4f5   : >> { %v5827_v63 = vadd.f32 %v7218_v37, %v5706_v3  ;;  %v5930_v47 = vadd.f32 %v5929_v8, %v5806_v0 }
 0x4f6   : >> { %v5819_v12 = vpop.f32.mrf.mxu0  ;;  %v5977_v29 = vpop.f32.mrf.mxu1 }
 0x4f7   : >> { %v5820_v33 = vadd.f32 %v5819_v12, %v5700_v18  ;;  %v5954_v39 = vadd.f32 %v7234_v32, %v5827_v63 }
 0x4f8   : >> { %v7221_v30 = vpop.f32.mrf.mxu0  ;;  %v7263_v45 = vpop.f32.mrf.mxu1 }
 0x4f9   : >> { %v5841_v31 = vadd.f32 %v7221_v30, %v5718_v61  ;;  %v5946_v36 = vadd.f32 %v5945_v11, %v5820_v33 }
 0x4fa   : >> { %v5833_v9 = vpop.f32.mrf.mxu0  ;;  %v6177_v42 = vpop.f32.mrf.mxu1 }
 0x4fb   : >> { %v5834_v5 = vadd.f32 %v5833_v9, %v5712_v6  ;;  %v5970_v15 = vadd.f32 %v7237_v60, %v5841_v31 }
 0x4fc   : >> { %v7224_v34 = vpop.f32.mrf.mxu0  ;;  %v7266_v52 = vpop.f32.mrf.mxu1 }
 0x4fd   : >> { %v5855_v44 = vadd.f32 %v7224_v34, %v5730_v20  ;;  %v5962_v48 = vadd.f32 %v5961_v43, %v5834_v5 }
 0x4fe   : >> { %v5847_v35 = vpop.f32.mrf.mxu0  ;;  %v6189_v27 = vpop.f32.mrf.mxu1 }
 0x4ff   : >> { %v5848_v38 = vadd.f32 %v5847_v35, %v5724_v22  ;;  %v5986_v10 = vadd.f32 %v7240_v1, %v5855_v44 }
 0x500   : >> { %v7247_v62 = vpop.f32.mrf.mxu0  ;;  %v7269_v56 = vpop.f32.mrf.mxu1 }
 0x501   : >> { %v6069_v40 = vadd.f32 %v7247_v62, %v5938_v51  ;;  %v5978_v26 = vadd.f32 %v5977_v29, %v5848_v38 }
 0x502   : >> { %v6062_v58 = vpop.f32.mrf.mxu0  ;;  %v6201_v57 = vpop.f32.mrf.mxu1 }
 0x503   : >> { %v6184_v28 = vadd.f32 %v7263_v45, %v6069_v40  ;;  %v6063_v53 = vadd.f32 %v6062_v58, %v5930_v47 }
 0x504   : >> { %v7250_v14 = vpop.f32.mrf.mxu0  ;;  %v7272_v17 = vpop.f32.mrf.mxu1 }
 0x505   : >> { %6393 = vst.msk [vmem:[%s8298_s8 + $0x18] sm:$0xff] %vm2441_vm1, %v6184_v28  ;;  %v6178_v49 = vadd.f32 %v6177_v42, %v6063_v53  ;;  %v6081_v7 = vadd.f32 %v7250_v14, %v5954_v39 }
 0x506   : >> { %v6074_v2 = vpop.f32.mrf.mxu0  ;;  %v6213_v23 = vpop.f32.mrf.mxu1 }
 0x507   : >> { %6392 = vst.msk [vmem:[%s8298_s8 + $0x10] sm:$0xff] %vm2441_vm1, %v6178_v49  ;;  %v6196_v16 = vadd.f32 %v7266_v52, %v6081_v7  ;;  %v6075_v59 = vadd.f32 %v6074_v2, %v5946_v36 }
 0x508   : >> { %v7253_v54 = vpop.f32.mrf.mxu0 }
 0x509   : >> { %6395 = vst.msk [vmem:[%s8298_s8 + $0x118] sm:$0xff] %vm2441_vm1, %v6196_v16  ;;  %v6190_v19 = vadd.f32 %v6189_v27, %v6075_v59  ;;  %v6093_v13 = vadd.f32 %v7253_v54, %v5970_v15 }
 0x50a   : >> { %v6086_v24 = vpop.f32.mrf.mxu0 }
 0x50b   : >> { %6394 = vst.msk [vmem:[%s8298_s8 + $0x110] sm:$0xff] %vm2441_vm1, %v6190_v19  ;;  %v6208_v25 = vadd.f32 %v7269_v56, %v6093_v13  ;;  %v6087_v46 = vadd.f32 %v6086_v24, %v5962_v48 }
 0x50c   : >> { %v7256_v8 = vpop.f32.mrf.mxu0 }
 0x50d   : >> { %6397 = vst.msk [vmem:[%s8298_s8 + $0x218] sm:$0xff] %vm2441_vm1, %v6208_v25  ;;  %v6202_v50 = vadd.f32 %v6201_v57, %v6087_v46  ;;  %v6105_v32 = vadd.f32 %v7256_v8, %v5986_v10 }
 0x50e   : >> { %v6098_v11 = vpop.f32.mrf.mxu0 }
 0x50f   : >> { %6396 = vst.msk [vmem:[%s8298_s8 + $0x210] sm:$0xff] %vm2441_vm1, %v6202_v50  ;;  %v6220_v55 = vadd.f32 %v7272_v17, %v6105_v32  ;;  %v6099_v60 = vadd.f32 %v6098_v11, %v5978_v26  ;;  %235 = sbr.rel (!%p233_p12) target bundleno = 26 (0x1a), region = 79 }
 0x511   : >> { %6399 = vst.msk [vmem:[%s8298_s8 + $0x318] sm:$0xff] %vm2441_vm1, %v6220_v55  ;;  %v6214_v43 = vadd.f32 %v6213_v23, %v6099_v60 }
 0x513   : >> { %6398 = vst.msk [vmem:[%s8298_s8 + $0x310] sm:$0xff] %vm2441_vm1, %v6214_v43 }
 0x514   : > { %7352 = shalt.err (!%p7349_p6)
}
 0x515   : > { %s7353_s26 = scalar_lea.hbm %s8567_s23, 16384  ;;  %s7357_s30 = scalar_lea.hbm %s8623_s3, 32768 }
 0x516   : > { %p7354_p7 = scmp.ne.s32.totalorder %s8567_s23, %s7353_s26  ;;  %p7358_p11 = scmp.lt.s32.totalorder %s8567_s23, %s8623_s3 }
 0x517   : > { %p7359_p12 = scmp.lt.s32.totalorder %s7357_s30, %s7353_s26 }
 0x518   : > { %p7355_p9 = pnand %p7354_p7, %p7488_p4 }
 0x519   : > { %p7360_p13 = por %p7359_p12, %p7358_p11 }
 0x51a   : > { %p7356_p10 = pneg %p7355_p9 }
 0x51c   : > { %p7361_p0 = pnand %p7360_p13, %p7356_p10 }
 0x51e   : > { %7364 = shalt.err (!%p7361_p0)
}
 0x51f   : > { %s7426_s7 = smov 128   ;;  %s7427_s8 = smov 8  }
 0x520   : > { %7273 = dma.vmem_to_hbm [thread:$0]  (%p7488_p4), %s8571_s27, 16384, %s8567_s23, %s8575_s11, %s7426_s7, %s7426_s7, %s7427_s8  }
 0x521 PF: > { %p7279_p1 = scmp.ge.s32.totalorder %s7419_s17, 2  ;;  %s6269_s18 = sand.u32 1, %s7399_s12  }
 0x522   : > { %s6270_s19 = scalar_lea.sflag [#allocation3], %s6269_s18 }
 0x523   : > { %p7276_p2 = pnand %p7279_p1, %p7495_p8 }
 0x525   : > { %p7277_p3 = pneg %p7276_p2 }
 0x527   : > { %7394 = dma.done.wait (%p7277_p3), %s6270_s19, 16384  }
 0x528   : > { %7396 = vsyncadd (%p7277_p3), %s6270_s19, 4294950912  ;;  %s16_s17 = sadd.s32 1, %s7419_s17   ;;  %s8694_s12 = smov %s7403_s13 }
 0x529   : > { %p13_p5 = scmp.ge.s32.totalorder %s16_s17, 4   ;;  %s8695_s13 = smov %s7407_s14 }
 0x52a   : > { %s8696_s14 = smov %s7501_s25  ;;  %s8697_s15 = smov %s7415_s16 }
 0x52b   : > { %s8698_s16 = smov %s8700_s20  ;;  %15 = sbr.rel (!%p13_p5) target bundleno = 4 (0x4), region = 90 }
 0x530   :  { %6275 = vsyncpa [#allocation3], 1 }
 0x531   :  { %6277 = vsyncpa [#allocation3 + $0x1], 1 }

</bundles_post_ra>
